<compile_context>
chip_gen: v6e
topology: v6e:2x2x1
jax: 0.10.0
libtpu: 0.0.40
codegen_flags: <defaults>
</compile_context>

<pallas_src>
import jax
import jax.numpy as jnp
from jax.experimental import pallas as pl
from jax.experimental.pallas import tpu as pltpu

# vocabulary special tokens (nn.Embedding(padding_idx=pad) => emb row PAD is zero)
PAD, BOS, EOS, UNK = 0, 1, 2, 3


def _gru_gates(gi_r, gi_z, gi_n, gh_r, gh_z, gh_n, h):
    """Standard torch GRUCell math with pre-split gates (all f32)."""
    r = jax.nn.sigmoid(gi_r + gh_r)
    u = jax.nn.sigmoid(gi_z + gh_z)
    n = jnp.tanh(gi_n + r * gh_n)
    return (1.0 - u) * n + u * h


# --------------------------------------------------------------------------- #
# Encoder + sampling kernel (grid = (batch blocks, T-chunks)).
# Per chunk: one batched MXU matmul per gate for the input projection, then the
# sequential GRU recurrence over the chunk; heads + reparameterization at the
# last chunk. Hidden state carried across chunks in VMEM scratch.
# --------------------------------------------------------------------------- #
def encoder_kernel(len_ref, xemb_ref, wih_ref, whh_ref, bih_ref, bhh_ref,
                   wmulv_ref, bmulv_ref, eps_ref,
                   z_ref, mu_ref, lv_ref,
                   h_ref, gr_ref, gz_ref, gn_ref):
    Tc, Bb, E = xemb_ref.shape
    L = eps_ref.shape[1]
    c = pl.program_id(1)

    @pl.when(c == 0)
    def _():
        h_ref[...] = jnp.zeros_like(h_ref)

    # ---- batched input projection for the whole chunk (one big matmul per gate)
    xe = xemb_ref[...].reshape(Tc * Bb, E)                                   # bf16
    for g_ref, g in ((gr_ref, 0), (gz_ref, 1), (gn_ref, 2)):
        gi = jnp.dot(xe, wih_ref[g], preferred_element_type=jnp.float32)     # (Tc*Bb, H)
        g_ref[...] = gi.reshape(Tc, Bb, g_ref.shape[2]) + bih_ref[g]

    lengths = len_ref[...]                                                   # (Bb, 1) int32
    whh_r, whh_z, whh_n = whh_ref[0], whh_ref[1], whh_ref[2]                 # bf16, hoisted
    bhh_r, bhh_z, bhh_n = bhh_ref[0], bhh_ref[1], bhh_ref[2]                 # f32

    def body(t, h):
        hb = h.astype(jnp.bfloat16)
        gh_r = jnp.dot(hb, whh_r, preferred_element_type=jnp.float32) + bhh_r
        gh_z = jnp.dot(hb, whh_z, preferred_element_type=jnp.float32) + bhh_z
        gh_n = jnp.dot(hb, whh_n, preferred_element_type=jnp.float32) + bhh_n
        h_new = _gru_gates(gr_ref[t], gz_ref[t], gn_ref[t], gh_r, gh_z, gh_n, h)
        t_global = c * Tc + t
        valid = (t_global < lengths).astype(jnp.float32)                     # pack mask
        return valid * h_new + (1.0 - valid) * h

    h_fin = jax.lax.fori_loop(0, Tc, body, h_ref[...])
    h_ref[...] = h_fin

    @pl.when(c == pl.num_programs(1) - 1)
    def _():
        hb = h_fin.astype(jnp.bfloat16)
        mulv = jnp.dot(hb, wmulv_ref[...], preferred_element_type=jnp.float32) + bmulv_ref[...]
        mu = mulv[:, :L]
        lv = mulv[:, L:]
        mu_ref[...] = mu
        lv_ref[...] = lv
        z_ref[...] = mu + eps_ref[...] * jnp.exp(0.5 * lv)


# --------------------------------------------------------------------------- #
# Decoder kernel (grid = (batch blocks, T-chunks)).
# Per chunk: batched x@W_ih per gate (+ loop-invariant z@W_ih_z + b_ih), sequential
# GRU over the chunk staging masked hidden states into scratch, then ONE
# (Tc*Bb,H)@(H,V) output projection and a single lane-dense store of the logits.
# --------------------------------------------------------------------------- #
def decoder_kernel(len_ref, xemb_ref, z_ref,
                   wz_ref, bz_ref,
                   wihx_ref, wihz_ref, whh_ref, bih_ref, bhh_ref,
                   wout_ref, bout_ref,
                   y_ref,
                   h_ref, gr_ref, gz_ref, gn_ref, hs_ref):
    Tc, Bb, E = xemb_ref.shape
    H = whh_ref.shape[1]
    V = y_ref.shape[2]
    c = pl.program_id(1)

    zb = z_ref[...].astype(jnp.bfloat16)                                     # (Bb, L)

    @pl.when(c == 0)
    def _():
        h_ref[...] = (jnp.dot(zb, wz_ref[...], preferred_element_type=jnp.float32)
                      + bz_ref[...])

    # ---- batched input projection: x part per chunk + loop-invariant z part + bias
    xe = xemb_ref[...].reshape(Tc * Bb, E)                                   # bf16
    for g_ref, g in ((gr_ref, 0), (gz_ref, 1), (gn_ref, 2)):
        gix = jnp.dot(xe, wihx_ref[g], preferred_element_type=jnp.float32).reshape(Tc, Bb, H)
        giz = jnp.dot(zb, wihz_ref[g], preferred_element_type=jnp.float32) + bih_ref[g]
        g_ref[...] = gix + giz                                               # (Tc,Bb,H)+(Bb,H)

    lengths = len_ref[...]                                                   # (Bb, 1) int32
    whh_r, whh_z, whh_n = whh_ref[0], whh_ref[1], whh_ref[2]                 # bf16, hoisted
    bhh_r, bhh_z, bhh_n = bhh_ref[0], bhh_ref[1], bhh_ref[2]                 # f32

    def body(t, h):
        hb = h.astype(jnp.bfloat16)
        gh_r = jnp.dot(hb, whh_r, preferred_element_type=jnp.float32) + bhh_r
        gh_z = jnp.dot(hb, whh_z, preferred_element_type=jnp.float32) + bhh_z
        gh_n = jnp.dot(hb, whh_n, preferred_element_type=jnp.float32) + bhh_n
        h_new = _gru_gates(gr_ref[t], gz_ref[t], gn_ref[t], gh_r, gh_z, gh_n, h)
        t_global = c * Tc + t
        valid = (t_global < lengths).astype(jnp.float32)
        h_next = valid * h_new + (1.0 - valid) * h
        hs_ref[t] = valid * h_next      # pad_packed_sequence(padding_value=0) before fc
        return h_next

    h_fin = jax.lax.fori_loop(0, Tc, body, h_ref[...])
    h_ref[...] = h_fin

    # ---- single output projection for the whole chunk, one lane-dense store
    hs = hs_ref[...].reshape(Tc * Bb, H).astype(jnp.bfloat16)
    logits = jnp.dot(hs, wout_ref[...], preferred_element_type=jnp.float32) + bout_ref[...]
    y_ref[...] = logits.reshape(Tc, Bb, V)


# --------------------------------------------------------------------------- #
# Glue: parameter construction, padding / embedding gather, pallas_call wrappers.
# --------------------------------------------------------------------------- #
def make_params(key, n_vocab, d_emb, d_hidden, d_latent):
    ks = jax.random.split(key, 16)

    def init(k, shape, scale=0.1):
        return (scale * jax.random.normal(k, shape)).astype(jnp.float32)

    emb = init(ks[0], (n_vocab, d_emb)).at[PAD].set(0.0)    # nn.Embedding(padding_idx=pad)

    return dict(
        emb=emb,
        # gate weights stacked on a leading axis: [r, z, n]
        enc_w_ih=init(ks[1], (3, d_emb, d_hidden)),
        enc_w_hh=init(ks[2], (3, d_hidden, d_hidden)),
        enc_b_ih=init(ks[3], (3, 1, d_hidden)),
        enc_b_hh=init(ks[4], (3, 1, d_hidden)),
        # fused mu / logvar head
        w_mulv=init(ks[5], (d_hidden, 2 * d_latent)),
        b_mulv=init(ks[6], (1, 2 * d_latent)),
        w_z2h=init(ks[7], (d_latent, d_hidden)),
        b_z2h=init(ks[8], (1, d_hidden)),
        dec_w_ih_x=init(ks[9], (3, d_emb, d_hidden)),        # x-part of [emb(x_t); z] input
        dec_w_ih_z=init(ks[10], (3, d_latent, d_hidden)),    # z-part (loop invariant)
        dec_w_hh=init(ks[11], (3, d_hidden, d_hidden)),
        dec_b_ih=init(ks[12], (3, 1, d_hidden)),
        dec_b_hh=init(ks[13], (3, 1, d_hidden)),
        w_out=init(ks[14], (d_hidden, n_vocab)),
        b_out=jnp.zeros((1, n_vocab), jnp.float32),
    )


def _round_up(x, m):
    return (x + m - 1) // m * m


def vae_forward(x_list, params, eps, *, block_t=4, block_b=16):
    """x_list: list of 1-D int32 token-id arrays, sorted by decreasing length
    (pack_sequence with enforce_sorted=True requires this)."""
    emb = params["emb"]
    n_vocab, d_emb = emb.shape
    H = params["enc_w_hh"].shape[1]
    L = params["w_z2h"].shape[0]

    B = len(x_list)
    T = max(int(t.shape[0]) for t in x_list)
    B_pad = _round_up(B, block_b)           # multiple of 16 (bf16 sublane packing)
    T_pad = _round_up(T, block_t)

    lengths = jnp.zeros((B_pad, 1), jnp.int32).at[:B, 0].set(
        jnp.array([int(t.shape[0]) for t in x_list], jnp.int32))
    ids = jnp.full((B_pad, T_pad), PAD, jnp.int32)
    for i, t in enumerate(x_list):
        ids = ids.at[i, : int(t.shape[0])].set(t.astype(jnp.int32))

    # Embedding gather in the glue (no one-hot); shared by encoder and decoder.
    x_emb = jnp.take(emb, ids, axis=0)                       # [B_pad, T_pad, E] (PAD row = 0)
    x_emb = jnp.transpose(x_emb, (1, 0, 2)).astype(jnp.bfloat16)   # [T_pad, B_pad, E]

    eps_p = jnp.zeros((B_pad, L), jnp.float32).at[:B].set(eps)

    bf = lambda a: a.astype(jnp.bfloat16)                    # MXU operands in bf16
    nb, nc = B_pad // block_b, T_pad // block_t

    cparams = pltpu.CompilerParams(
        dimension_semantics=("parallel", "arbitrary"),       # batch parallel / T-chunks serial
        vmem_limit_bytes=32 * 1024 * 1024,                   # raise for larger configs
    )

    def full(a):
        # whole-array VMEM operand, constant block index (loaded once, stays resident)
        nd = a.ndim
        return pl.BlockSpec(a.shape, lambda b, c, _nd=nd: (0,) * _nd)

    # ------------------------------ encoder + sampling ------------------------------ #
    enc_in = [lengths, x_emb,
              bf(params["enc_w_ih"]), bf(params["enc_w_hh"]),
              params["enc_b_ih"], params["enc_b_hh"],
              bf(params["w_mulv"]), params["b_mulv"], eps_p]

    z, mu, logvar = pl.pallas_call(
        encoder_kernel,
        out_shape=(jax.ShapeDtypeStruct((B_pad, L), jnp.float32),) * 3,
        grid_spec=pltpu.PrefetchScalarGridSpec(
            num_scalar_prefetch=0,
            grid=(nb, nc),
            in_specs=[
                pl.BlockSpec((block_b, 1), lambda b, c: (b, 0)),                 # lengths
                pl.BlockSpec((block_t, block_b, d_emb), lambda b, c: (c, b, 0)),  # x_emb chunk
                full(enc_in[2]), full(enc_in[3]), full(enc_in[4]), full(enc_in[5]),
                full(enc_in[6]), full(enc_in[7]),
                pl.BlockSpec((block_b, L), lambda b, c: (b, 0)),                 # eps
            ],
            out_specs=(pl.BlockSpec((block_b, L), lambda b, c: (b, 0)),) * 3,
            scratch_shapes=[pltpu.VMEM((block_b, H), jnp.float32)]               # h carry
                         + [pltpu.VMEM((block_t, block_b, H), jnp.float32)] * 3, # gi_r/z/n
        ),
        compiler_params=cparams,
    )(*enc_in)

    # ------------------------------------ decoder ------------------------------------ #
    dec_in = [lengths, x_emb, z,
              bf(params["w_z2h"]), params["b_z2h"],
              bf(params["dec_w_ih_x"]), bf(params["dec_w_ih_z"]), bf(params["dec_w_hh"]),
              params["dec_b_ih"], params["dec_b_hh"],
              bf(params["w_out"]), params["b_out"]]

    y_tbv = pl.pallas_call(
        decoder_kernel,
        out_shape=jax.ShapeDtypeStruct((T_pad, B_pad, n_vocab), jnp.float32),
        grid_spec=pltpu.PrefetchScalarGridSpec(
            num_scalar_prefetch=0,
            grid=(nb, nc),
            in_specs=[
                pl.BlockSpec((block_b, 1), lambda b, c: (b, 0)),                 # lengths
                pl.BlockSpec((block_t, block_b, d_emb), lambda b, c: (c, b, 0)),  # x_emb chunk
                pl.BlockSpec((block_b, L), lambda b, c: (b, 0)),                 # z
                full(dec_in[3]), full(dec_in[4]), full(dec_in[5]), full(dec_in[6]),
                full(dec_in[7]), full(dec_in[8]), full(dec_in[9]),
                full(dec_in[10]), full(dec_in[11]),
            ],
            out_specs=pl.BlockSpec((block_t, block_b, n_vocab), lambda b, c: (c, b, 0)),
            scratch_shapes=[pltpu.VMEM((block_b, H), jnp.float32)]               # h carry
                         + [pltpu.VMEM((block_t, block_b, H), jnp.float32)] * 4, # gi_r/z/n, hs
        ),
        compiler_params=cparams,
    )(*dec_in)

    y = jnp.transpose(y_tbv[:T, :B], (1, 0, 2))              # [B, T, V]
    return y, mu[:B], logvar[:B]


if __name__ == "__main__":
    # small but lane-aligned demo dims (V, E, H, L all multiples of 128)
    n_vocab, d_emb, d_hidden, d_latent = 128, 128, 128, 128

    key = jax.random.PRNGKey(0)
    k_par, k_x0, k_x1, k_eps = jax.random.split(key, 4)

    params = make_params(k_par, n_vocab, d_emb, d_hidden, d_latent)

    # two variable-length sequences (sorted desc, as pack_sequence requires)
    x0 = jax.random.randint(k_x0, (9,), 4, n_vocab, dtype=jnp.int32)
    x1 = jax.random.randint(k_x1, (5,), 4, n_vocab, dtype=jnp.int32)
    x_list = [x0, x1]

    eps = jax.random.normal(k_eps, (len(x_list), d_latent), dtype=jnp.float32)

    y, mu, logvar = vae_forward(x_list, params, eps, block_t=4, block_b=16)
    jax.block_until_ready((y, mu, logvar))

    assert y.shape == (2, 9, n_vocab)
    assert mu.shape == (2, d_latent) and logvar.shape == (2, d_latent)
    print("KERNEL_OK")
</pallas_src>

<mosaic_0001>
module attributes {stable_mosaic.version = 11 : i64} {
  func.func @encoder_kernel(%arg0: i32, %arg1: i32, %arg2: memref<16x1xi32, #tpu.memory_space<vmem>>, %arg3: memref<4x16x128xbf16, #tpu.memory_space<vmem>>, %arg4: memref<3x128x128xbf16, #tpu.memory_space<vmem>>, %arg5: memref<3x128x128xbf16, #tpu.memory_space<vmem>>, %arg6: memref<3x1x128xf32, #tpu.memory_space<vmem>>, %arg7: memref<3x1x128xf32, #tpu.memory_space<vmem>>, %arg8: memref<128x256xbf16, #tpu.memory_space<vmem>>, %arg9: memref<1x256xf32, #tpu.memory_space<vmem>>, %arg10: memref<16x128xf32, #tpu.memory_space<vmem>>, %arg11: memref<16x128xf32, #tpu.memory_space<vmem>>, %arg12: memref<16x128xf32, #tpu.memory_space<vmem>>, %arg13: memref<16x128xf32, #tpu.memory_space<vmem>>, %arg14: memref<16x128xf32, #tpu.memory_space<vmem>>, %arg15: memref<4x16x128xf32, #tpu.memory_space<vmem>>, %arg16: memref<4x16x128xf32, #tpu.memory_space<vmem>>, %arg17: memref<4x16x128xf32, #tpu.memory_space<vmem>>) attributes {dimension_semantics = [#tpu.dimension_semantics<parallel>, #tpu.dimension_semantics<arbitrary>], iteration_bounds = array<i64: 1, 3>, scalar_prefetch = 0 : i64, scratch_operands = 4 : i64, tpu.core_type = #tpu.core_type<tc>, window_params = [{transform_indices = @transform_0, window_bounds = array<i64: 16, 1>}, {transform_indices = @transform_1, window_bounds = array<i64: 4, 16, 128>}, {pipeline_mode = #tpu.pipeline_mode<synchronous>, transform_indices = @transform_2, window_bounds = array<i64: 3, 128, 128>}, {pipeline_mode = #tpu.pipeline_mode<synchronous>, transform_indices = @transform_3, window_bounds = array<i64: 3, 128, 128>}, {pipeline_mode = #tpu.pipeline_mode<synchronous>, transform_indices = @transform_4, window_bounds = array<i64: 3, 1, 128>}, {pipeline_mode = #tpu.pipeline_mode<synchronous>, transform_indices = @transform_5, window_bounds = array<i64: 3, 1, 128>}, {pipeline_mode = #tpu.pipeline_mode<synchronous>, transform_indices = @transform_6, window_bounds = array<i64: 128, 256>}, {pipeline_mode = #tpu.pipeline_mode<synchronous>, transform_indices = @transform_7, window_bounds = array<i64: 1, 256>}, {transform_indices = @transform_8, window_bounds = array<i64: 16, 128>}, {transform_indices = @transform_9, window_bounds = array<i64: 16, 128>}, {transform_indices = @transform_10, window_bounds = array<i64: 16, 128>}, {transform_indices = @transform_11, window_bounds = array<i64: 16, 128>}]} {
    %c0_i32 = arith.constant 0 : i32
    %0 = arith.cmpi eq, %arg1, %c0_i32 : i32
    %1 = arith.extui %0 : i1 to i32
    %c0_i32_0 = arith.constant 0 : i32
    %2 = arith.cmpi ne, %1, %c0_i32_0 : i32
    scf.if %2 {
      %cst_57 = arith.constant 0.000000e+00 : f32
      %55 = vector.broadcast %cst_57 : f32 to vector<16x128xf32>
      %c0_58 = arith.constant 0 : index
      %c0_59 = arith.constant 0 : index
      %56 = vector.load %arg14[%c0_58, %c0_59] : memref<16x128xf32, #tpu.memory_space<vmem>>, vector<16x128xf32>
      tpu.vector_store %arg14[%c0_58, %c0_59], %55 {strides = array<i32>} : memref<16x128xf32, #tpu.memory_space<vmem>>, vector<16x128xf32>,
    } else {
    }
    %c0 = arith.constant 0 : index
    %c0_1 = arith.constant 0 : index
    %c0_2 = arith.constant 0 : index
    %3 = vector.load %arg3[%c0, %c0_1, %c0_2] : memref<4x16x128xbf16, #tpu.memory_space<vmem>>, vector<4x16x128xbf16>
    %4 = vector.shape_cast %3 : vector<4x16x128xbf16> to vector<64x128xbf16>
    %c0_3 = arith.constant 0 : index
    %c0_4 = arith.constant 0 : index
    %c0_5 = arith.constant 0 : index
    %5 = vector.load %arg4[%c0_3, %c0_4, %c0_5] : memref<3x128x128xbf16, #tpu.memory_space<vmem>>, vector<1x128x128xbf16>
    %6 = vector.shape_cast %5 : vector<1x128x128xbf16> to vector<128x128xbf16>
    %cst = arith.constant dense<0.000000e+00> : vector<64x128xf32>
    %7 = tpu.matmul %4, %6, %cst {dimension_numbers = #tpu.dot_dimension_numbers<[1], [0], [0], [1], [0, 0, 1, 1], [], []>} : vector<64x128xbf16>, vector<128x128xbf16>, vector<64x128xf32> -> vector<64x128xf32>
    %8 = vector.shape_cast %7 : vector<64x128xf32> to vector<4x16x128xf32>
    %c0_6 = arith.constant 0 : index
    %c0_7 = arith.constant 0 : index
    %c0_8 = arith.constant 0 : index
    %9 = vector.load %arg6[%c0_6, %c0_7, %c0_8] : memref<3x1x128xf32, #tpu.memory_space<vmem>>, vector<1x1x128xf32>
    %10 = vector.shape_cast %9 : vector<1x1x128xf32> to vector<1x128xf32>
    %11 = vector.shape_cast %10 : vector<1x128xf32> to vector<1x1x128xf32>
    %12 = vector.broadcast %11 : vector<1x1x128xf32> to vector<4x16x128xf32>
    %13 = arith.addf %8, %12 : vector<4x16x128xf32>
    %c0_9 = arith.constant 0 : index
    %c0_10 = arith.constant 0 : index
    %c0_11 = arith.constant 0 : index
    %14 = vector.load %arg15[%c0_9, %c0_10, %c0_11] : memref<4x16x128xf32, #tpu.memory_space<vmem>>, vector<4x16x128xf32>
    tpu.vector_store %arg15[%c0_9, %c0_10, %c0_11], %13 {strides = array<i32>} : memref<4x16x128xf32, #tpu.memory_space<vmem>>, vector<4x16x128xf32>,
    %c1 = arith.constant 1 : index
    %c0_12 = arith.constant 0 : index
    %c0_13 = arith.constant 0 : index
    %15 = vector.load %arg4[%c1, %c0_12, %c0_13] : memref<3x128x128xbf16, #tpu.memory_space<vmem>>, vector<1x128x128xbf16>
    %16 = vector.shape_cast %15 : vector<1x128x128xbf16> to vector<128x128xbf16>
    %cst_14 = arith.constant dense<0.000000e+00> : vector<64x128xf32>
    %17 = tpu.matmul %4, %16, %cst_14 {dimension_numbers = #tpu.dot_dimension_numbers<[1], [0], [0], [1], [0, 0, 1, 1], [], []>} : vector<64x128xbf16>, vector<128x128xbf16>, vector<64x128xf32> -> vector<64x128xf32>
    %18 = vector.shape_cast %17 : vector<64x128xf32> to vector<4x16x128xf32>
    %c1_15 = arith.constant 1 : index
    %c0_16 = arith.constant 0 : index
    %c0_17 = arith.constant 0 : index
    %19 = vector.load %arg6[%c1_15, %c0_16, %c0_17] : memref<3x1x128xf32, #tpu.memory_space<vmem>>, vector<1x1x128xf32>
    %20 = vector.shape_cast %19 : vector<1x1x128xf32> to vector<1x128xf32>
    %21 = vector.shape_cast %20 : vector<1x128xf32> to vector<1x1x128xf32>
    %22 = vector.broadcast %21 : vector<1x1x128xf32> to vector<4x16x128xf32>
    %23 = arith.addf %18, %22 : vector<4x16x128xf32>
    %c0_18 = arith.constant 0 : index
    %c0_19 = arith.constant 0 : index
    %c0_20 = arith.constant 0 : index
    %24 = vector.load %arg16[%c0_18, %c0_19, %c0_20] : memref<4x16x128xf32, #tpu.memory_space<vmem>>, vector<4x16x128xf32>
    tpu.vector_store %arg16[%c0_18, %c0_19, %c0_20], %23 {strides = array<i32>} : memref<4x16x128xf32, #tpu.memory_space<vmem>>, vector<4x16x128xf32>,
    %c2 = arith.constant 2 : index
    %c0_21 = arith.constant 0 : index
    %c0_22 = arith.constant 0 : index
    %25 = vector.load %arg4[%c2, %c0_21, %c0_22] : memref<3x128x128xbf16, #tpu.memory_space<vmem>>, vector<1x128x128xbf16>
    %26 = vector.shape_cast %25 : vector<1x128x128xbf16> to vector<128x128xbf16>
    %cst_23 = arith.constant dense<0.000000e+00> : vector<64x128xf32>
    %27 = tpu.matmul %4, %26, %cst_23 {dimension_numbers = #tpu.dot_dimension_numbers<[1], [0], [0], [1], [0, 0, 1, 1], [], []>} : vector<64x128xbf16>, vector<128x128xbf16>, vector<64x128xf32> -> vector<64x128xf32>
    %28 = vector.shape_cast %27 : vector<64x128xf32> to vector<4x16x128xf32>
    %c2_24 = arith.constant 2 : index
    %c0_25 = arith.constant 0 : index
    %c0_26 = arith.constant 0 : index
    %29 = vector.load %arg6[%c2_24, %c0_25, %c0_26] : memref<3x1x128xf32, #tpu.memory_space<vmem>>, vector<1x1x128xf32>
    %30 = vector.shape_cast %29 : vector<1x1x128xf32> to vector<1x128xf32>
    %31 = vector.shape_cast %30 : vector<1x128xf32> to vector<1x1x128xf32>
    %32 = vector.broadcast %31 : vector<1x1x128xf32> to vector<4x16x128xf32>
    %33 = arith.addf %28, %32 : vector<4x16x128xf32>
    %c0_27 = arith.constant 0 : index
    %c0_28 = arith.constant 0 : index
    %c0_29 = arith.constant 0 : index
    %34 = vector.load %arg17[%c0_27, %c0_28, %c0_29] : memref<4x16x128xf32, #tpu.memory_space<vmem>>, vector<4x16x128xf32>
    tpu.vector_store %arg17[%c0_27, %c0_28, %c0_29], %33 {strides = array<i32>} : memref<4x16x128xf32, #tpu.memory_space<vmem>>, vector<4x16x128xf32>,
    %c0_30 = arith.constant 0 : index
    %c0_31 = arith.constant 0 : index
    %35 = vector.load %arg2[%c0_30, %c0_31] : memref<16x1xi32, #tpu.memory_space<vmem>>, vector<16x1xi32>
    %c0_32 = arith.constant 0 : index
    %c0_33 = arith.constant 0 : index
    %c0_34 = arith.constant 0 : index
    %36 = vector.load %arg5[%c0_32, %c0_33, %c0_34] : memref<3x128x128xbf16, #tpu.memory_space<vmem>>, vector<1x128x128xbf16>
    %37 = vector.shape_cast %36 : vector<1x128x128xbf16> to vector<128x128xbf16>
    %c1_35 = arith.constant 1 : index
    %c0_36 = arith.constant 0 : index
    %c0_37 = arith.constant 0 : index
    %38 = vector.load %arg5[%c1_35, %c0_36, %c0_37] : memref<3x128x128xbf16, #tpu.memory_space<vmem>>, vector<1x128x128xbf16>
    %39 = vector.shape_cast %38 : vector<1x128x128xbf16> to vector<128x128xbf16>
    %c2_38 = arith.constant 2 : index
    %c0_39 = arith.constant 0 : index
    %c0_40 = arith.constant 0 : index
    %40 = vector.load %arg5[%c2_38, %c0_39, %c0_40] : memref<3x128x128xbf16, #tpu.memory_space<vmem>>, vector<1x128x128xbf16>
    %41 = vector.shape_cast %40 : vector<1x128x128xbf16> to vector<128x128xbf16>
    %c0_41 = arith.constant 0 : index
    %c0_42 = arith.constant 0 : index
    %c0_43 = arith.constant 0 : index
    %42 = vector.load %arg7[%c0_41, %c0_42, %c0_43] : memref<3x1x128xf32, #tpu.memory_space<vmem>>, vector<1x1x128xf32>
    %43 = vector.shape_cast %42 : vector<1x1x128xf32> to vector<1x128xf32>
    %c1_44 = arith.constant 1 : index
    %c0_45 = arith.constant 0 : index
    %c0_46 = arith.constant 0 : index
    %44 = vector.load %arg7[%c1_44, %c0_45, %c0_46] : memref<3x1x128xf32, #tpu.memory_space<vmem>>, vector<1x1x128xf32>
    %45 = vector.shape_cast %44 : vector<1x1x128xf32> to vector<1x128xf32>
    %c2_47 = arith.constant 2 : index
    %c0_48 = arith.constant 0 : index
    %c0_49 = arith.constant 0 : index
    %46 = vector.load %arg7[%c2_47, %c0_48, %c0_49] : memref<3x1x128xf32, #tpu.memory_space<vmem>>, vector<1x1x128xf32>
    %47 = vector.shape_cast %46 : vector<1x1x128xf32> to vector<1x128xf32>
    %c0_50 = arith.constant 0 : index
    %c0_51 = arith.constant 0 : index
    %48 = vector.load %arg14[%c0_50, %c0_51] : memref<16x128xf32, #tpu.memory_space<vmem>>, vector<16x128xf32>
    %c0_i32_52 = arith.constant 0 : i32
    %c4_i32 = arith.constant 4 : i32
    %49 = arith.addi %c0_i32_52, %c4_i32 : i32
    %c1_i32 = arith.constant 1 : i32
    %50 = scf.for %arg18 = %c0_i32_52 to %49 step %c1_i32 iter_args(%arg19 = %48) -> (vector<16x128xf32>)  : i32 {
      %55 = arith.truncf %arg19 : vector<16x128xf32> to vector<16x128xbf16>
      %cst_57 = arith.constant dense<0.000000e+00> : vector<16x128xf32>
      %56 = tpu.matmul %55, %37, %cst_57 {dimension_numbers = #tpu.dot_dimension_numbers<[1], [0], [0], [1], [0, 0, 1, 1], [], []>} : vector<16x128xbf16>, vector<128x128xbf16>, vector<16x128xf32> -> vector<16x128xf32>
      %57 = vector.broadcast %43 : vector<1x128xf32> to vector<16x128xf32>
      %58 = arith.addf %56, %57 : vector<16x128xf32>
      %cst_58 = arith.constant dense<0.000000e+00> : vector<16x128xf32>
      %59 = tpu.matmul %55, %39, %cst_58 {dimension_numbers = #tpu.dot_dimension_numbers<[1], [0], [0], [1], [0, 0, 1, 1], [], []>} : vector<16x128xbf16>, vector<128x128xbf16>, vector<16x128xf32> -> vector<16x128xf32>
      %60 = vector.broadcast %45 : vector<1x128xf32> to vector<16x128xf32>
      %61 = arith.addf %59, %60 : vector<16x128xf32>
      %cst_59 = arith.constant dense<0.000000e+00> : vector<16x128xf32>
      %62 = tpu.matmul %55, %41, %cst_59 {dimension_numbers = #tpu.dot_dimension_numbers<[1], [0], [0], [1], [0, 0, 1, 1], [], []>} : vector<16x128xbf16>, vector<128x128xbf16>, vector<16x128xf32> -> vector<16x128xf32>
      %63 = vector.broadcast %47 : vector<1x128xf32> to vector<16x128xf32>
      %64 = arith.addf %62, %63 : vector<16x128xf32>
      %65 = arith.index_cast %arg18 : i32 to index
      %c0_60 = arith.constant 0 : index
      %c0_61 = arith.constant 0 : index
      %66 = vector.load %arg15[%65, %c0_60, %c0_61] : memref<4x16x128xf32, #tpu.memory_space<vmem>>, vector<1x16x128xf32>
      %67 = vector.shape_cast %66 : vector<1x16x128xf32> to vector<16x128xf32>
      %68 = arith.index_cast %arg18 : i32 to index
      %c0_62 = arith.constant 0 : index
      %c0_63 = arith.constant 0 : index
      %69 = vector.load %arg16[%68, %c0_62, %c0_63] : memref<4x16x128xf32, #tpu.memory_space<vmem>>, vector<1x16x128xf32>
      %70 = vector.shape_cast %69 : vector<1x16x128xf32> to vector<16x128xf32>
      %71 = arith.index_cast %arg18 : i32 to index
      %c0_64 = arith.constant 0 : index
      %c0_65 = arith.constant 0 : index
      %72 = vector.load %arg17[%71, %c0_64, %c0_65] : memref<4x16x128xf32, #tpu.memory_space<vmem>>, vector<1x16x128xf32>
      %73 = vector.shape_cast %72 : vector<1x16x128xf32> to vector<16x128xf32>
      %74 = arith.addf %67, %58 : vector<16x128xf32>
      %75 = arith.negf %74 : vector<16x128xf32>
      %76 = math.exp %75 : vector<16x128xf32>
      %cst_66 = arith.constant 1.000000e+00 : f32
      %77 = vector.broadcast %cst_66 : f32 to vector<16x128xf32>
      %78 = arith.addf %77, %76 : vector<16x128xf32>
      %79 = arith.divf %77, %78 : vector<16x128xf32>
      %80 = arith.addf %70, %61 : vector<16x128xf32>
      %81 = arith.negf %80 : vector<16x128xf32>
      %82 = math.exp %81 : vector<16x128xf32>
      %cst_67 = arith.constant 1.000000e+00 : f32
      %83 = vector.broadcast %cst_67 : f32 to vector<16x128xf32>
      %84 = arith.addf %83, %82 : vector<16x128xf32>
      %85 = arith.divf %83, %84 : vector<16x128xf32>
      %86 = arith.mulf %79, %64 : vector<16x128xf32>
      %87 = arith.addf %73, %86 : vector<16x128xf32>
      %88 = math.tanh %87 : vector<16x128xf32>
      %cst_68 = arith.constant 1.000000e+00 : f32
      %89 = vector.broadcast %cst_68 : f32 to vector<16x128xf32>
      %90 = arith.subf %89, %85 : vector<16x128xf32>
      %91 = arith.mulf %90, %88 : vector<16x128xf32>
      %92 = arith.mulf %85, %arg19 : vector<16x128xf32>
      %93 = arith.addf %91, %92 : vector<16x128xf32>
      %c4_i32_69 = arith.constant 4 : i32
      %94 = arith.muli %arg1, %c4_i32_69 : i32
      %95 = arith.addi %94, %arg18 : i32
      %96 = vector.broadcast %95 : i32 to vector<16x1xi32>
      %97 = arith.cmpi slt, %96, %35 : vector<16x1xi32>
      %98 = arith.extui %97 : vector<16x1xi1> to vector<16x1xi32>
      %99 = arith.sitofp %98 : vector<16x1xi32> to vector<16x1xf32>
      %100 = vector.broadcast %99 : vector<16x1xf32> to vector<16x128xf32>
      %101 = arith.mulf %100, %93 : vector<16x128xf32>
      %cst_70 = arith.constant 1.000000e+00 : f32
      %102 = vector.broadcast %cst_70 : f32 to vector<16x1xf32>
      %103 = arith.subf %102, %99 : vector<16x1xf32>
      %104 = vector.broadcast %103 : vector<16x1xf32> to vector<16x128xf32>
      %105 = arith.mulf %104, %arg19 : vector<16x128xf32>
      %106 = arith.addf %101, %105 : vector<16x128xf32>
      scf.yield %106 : vector<16x128xf32>
    }
    %c4_i32_53 = arith.constant 4 : i32
    %c0_54 = arith.constant 0 : index
    %c0_55 = arith.constant 0 : index
    %51 = vector.load %arg14[%c0_54, %c0_55] : memref<16x128xf32, #tpu.memory_space<vmem>>, vector<16x128xf32>
    tpu.vector_store %arg14[%c0_54, %c0_55], %50 {strides = array<i32>} : memref<16x128xf32, #tpu.memory_space<vmem>>, vector<16x128xf32>,
    %c2_i32 = arith.constant 2 : i32
    %52 = arith.cmpi eq, %arg1, %c2_i32 : i32
    %53 = arith.extui %52 : i1 to i32
    %c0_i32_56 = arith.constant 0 : i32
    %54 = arith.cmpi ne, %53, %c0_i32_56 : i32
    scf.if %54 {
      %55 = arith.truncf %50 : vector<16x128xf32> to vector<16x128xbf16>
      %c0_57 = arith.constant 0 : index
      %c0_58 = arith.constant 0 : index
      %56 = vector.load %arg8[%c0_57, %c0_58] : memref<128x256xbf16, #tpu.memory_space<vmem>>, vector<128x256xbf16>
      %cst_59 = arith.constant dense<0.000000e+00> : vector<16x256xf32>
      %57 = tpu.matmul %55, %56, %cst_59 {dimension_numbers = #tpu.dot_dimension_numbers<[1], [0], [0], [1], [0, 0, 1, 1], [], []>} : vector<16x128xbf16>, vector<128x256xbf16>, vector<16x256xf32> -> vector<16x256xf32>
      %c0_60 = arith.constant 0 : index
      %c0_61 = arith.constant 0 : index
      %58 = vector.load %arg9[%c0_60, %c0_61] : memref<1x256xf32, #tpu.memory_space<vmem>>, vector<1x256xf32>
      %59 = vector.broadcast %58 : vector<1x256xf32> to vector<16x256xf32>
      %60 = arith.addf %57, %59 : vector<16x256xf32>
      %61 = vector.extract_strided_slice %60 {offsets = [0, 0], sizes = [16, 128], strides = [1, 1]} : vector<16x256xf32> to vector<16x128xf32>
      %62 = vector.extract_strided_slice %60 {offsets = [0, 128], sizes = [16, 128], strides = [1, 1]} : vector<16x256xf32> to vector<16x128xf32>
      %c0_62 = arith.constant 0 : index
      %c0_63 = arith.constant 0 : index
      %63 = vector.load %arg12[%c0_62, %c0_63] : memref<16x128xf32, #tpu.memory_space<vmem>>, vector<16x128xf32>
      tpu.vector_store %arg12[%c0_62, %c0_63], %61 {strides = array<i32>} : memref<16x128xf32, #tpu.memory_space<vmem>>, vector<16x128xf32>,
      %c0_64 = arith.constant 0 : index
      %c0_65 = arith.constant 0 : index
      %64 = vector.load %arg13[%c0_64, %c0_65] : memref<16x128xf32, #tpu.memory_space<vmem>>, vector<16x128xf32>
      tpu.vector_store %arg13[%c0_64, %c0_65], %62 {strides = array<i32>} : memref<16x128xf32, #tpu.memory_space<vmem>>, vector<16x128xf32>,
      %c0_66 = arith.constant 0 : index
      %c0_67 = arith.constant 0 : index
      %65 = vector.load %arg10[%c0_66, %c0_67] : memref<16x128xf32, #tpu.memory_space<vmem>>, vector<16x128xf32>
      %cst_68 = arith.constant 5.000000e-01 : f32
      %66 = vector.broadcast %cst_68 : f32 to vector<16x128xf32>
      %67 = arith.mulf %66, %62 : vector<16x128xf32>
      %68 = math.exp %67 : vector<16x128xf32>
      %69 = arith.mulf %65, %68 : vector<16x128xf32>
      %70 = arith.addf %61, %69 : vector<16x128xf32>
      %c0_69 = arith.constant 0 : index
      %c0_70 = arith.constant 0 : index
      %71 = vector.load %arg11[%c0_69, %c0_70] : memref<16x128xf32, #tpu.memory_space<vmem>>, vector<16x128xf32>
      tpu.vector_store %arg11[%c0_69, %c0_70], %70 {strides = array<i32>} : memref<16x128xf32, #tpu.memory_space<vmem>>, vector<16x128xf32>,
    } else {
    }
    return
  }
  func.func @transform_0(%arg0: i32, %arg1: i32) -> (i32, i32) {
    %c0_i32 = arith.constant 0 : i32
    %c0_i32_0 = arith.constant 0 : i32
    return %arg0, %c0_i32 : i32, i32
  }
  func.func @transform_1(%arg0: i32, %arg1: i32) -> (i32, i32, i32) {
    %c0_i32 = arith.constant 0 : i32
    %c0_i32_0 = arith.constant 0 : i32
    return %arg1, %arg0, %c0_i32 : i32, i32, i32
  }
  func.func @transform_2(%arg0: i32, %arg1: i32) -> (i32, i32, i32) {
    %c0_i32 = arith.constant 0 : i32
    %c0_i32_0 = arith.constant 0 : i32
    %c0_i32_1 = arith.constant 0 : i32
    %c0_i32_2 = arith.constant 0 : i32
    return %c0_i32, %c0_i32_0, %c0_i32_1 : i32, i32, i32
  }
  func.func @transform_3(%arg0: i32, %arg1: i32) -> (i32, i32, i32) {
    %c0_i32 = arith.constant 0 : i32
    %c0_i32_0 = arith.constant 0 : i32
    %c0_i32_1 = arith.constant 0 : i32
    %c0_i32_2 = arith.constant 0 : i32
    return %c0_i32, %c0_i32_0, %c0_i32_1 : i32, i32, i32
  }
  func.func @transform_4(%arg0: i32, %arg1: i32) -> (i32, i32, i32) {
    %c0_i32 = arith.constant 0 : i32
    %c0_i32_0 = arith.constant 0 : i32
    %c0_i32_1 = arith.constant 0 : i32
    %c0_i32_2 = arith.constant 0 : i32
    return %c0_i32, %c0_i32_0, %c0_i32_1 : i32, i32, i32
  }
  func.func @transform_5(%arg0: i32, %arg1: i32) -> (i32, i32, i32) {
    %c0_i32 = arith.constant 0 : i32
    %c0_i32_0 = arith.constant 0 : i32
    %c0_i32_1 = arith.constant 0 : i32
    %c0_i32_2 = arith.constant 0 : i32
    return %c0_i32, %c0_i32_0, %c0_i32_1 : i32, i32, i32
  }
  func.func @transform_6(%arg0: i32, %arg1: i32) -> (i32, i32) {
    %c0_i32 = arith.constant 0 : i32
    %c0_i32_0 = arith.constant 0 : i32
    %c0_i32_1 = arith.constant 0 : i32
    return %c0_i32, %c0_i32_0 : i32, i32
  }
  func.func @transform_7(%arg0: i32, %arg1: i32) -> (i32, i32) {
    %c0_i32 = arith.constant 0 : i32
    %c0_i32_0 = arith.constant 0 : i32
    %c0_i32_1 = arith.constant 0 : i32
    return %c0_i32, %c0_i32_0 : i32, i32
  }
  func.func @transform_8(%arg0: i32, %arg1: i32) -> (i32, i32) {
    %c0_i32 = arith.constant 0 : i32
    %c0_i32_0 = arith.constant 0 : i32
    return %arg0, %c0_i32 : i32, i32
  }
  func.func @transform_9(%arg0: i32, %arg1: i32) -> (i32, i32) {
    %c0_i32 = arith.constant 0 : i32
    %c0_i32_0 = arith.constant 0 : i32
    return %arg0, %c0_i32 : i32, i32
  }
  func.func @transform_10(%arg0: i32, %arg1: i32) -> (i32, i32) {
    %c0_i32 = arith.constant 0 : i32
    %c0_i32_0 = arith.constant 0 : i32
    return %arg0, %c0_i32 : i32, i32
  }
  func.func @transform_11(%arg0: i32, %arg1: i32) -> (i32, i32) {
    %c0_i32 = arith.constant 0 : i32
    %c0_i32_0 = arith.constant 0 : i32
    return %arg0, %c0_i32 : i32, i32
  }
}

</mosaic_0001>

<bundles_post_ra>
// kernel: tpu_custom_call.1
= control target key start
LH: loop header
LB: loop body
LE: loop exit
PB: predicated region body
PF: predicated region fallthrough
CT: control target
= control target key end

     0   :  { %s3210_s0 = inlined_call_operand.vmem [shape: s32[16,1], index: 0, kind: input, shape index: {}]   ;;  %s3211_s1 = inlined_call_operand.hbm [shape: bf16[12,16,128], index: 1, kind: input, shape index: {}]   ;;  %s3212_s2 = inlined_call_operand.hbm [shape: bf16[3,128,128], index: 2, kind: input, shape index: {}]   ;;  %s3213_s3 = inlined_call_operand.hbm [shape: bf16[3,128,128], index: 3, kind: input, shape index: {}]   ;;  %s3214_s4 = inlined_call_operand.vmem [shape: f32[3,1,128], index: 4, kind: input, shape index: {}]   ;;  %s3215_s5 = inlined_call_operand.vmem [shape: f32[3,1,128], index: 5, kind: input, shape index: {}]   ;;  %s3216_s6 = inlined_call_operand.hbm [shape: bf16[128,256], index: 6, kind: input, shape index: {}]   ;;  %s3217_s7 = inlined_call_operand.vmem [shape: f32[1,256], index: 7, kind: input, shape index: {}]   ;;  %s3218_s8 = inlined_call_operand.vmem [shape: f32[16,128], index: 8, kind: input, shape index: {}]   ;;  %s3219_s9 = inlined_call_operand.hbm [shape: f32[16,128], index: 9, kind: output, shape index: {0}]   ;;  %s3220_s10 = inlined_call_operand.hbm [shape: f32[16,128], index: 10, kind: output, shape index: {1}]   ;;  %s3221_s11 = inlined_call_operand.hbm [shape: f32[16,128], index: 11, kind: output, shape index: {2}]  }
   0x1   :  { %3229 = sst [smem:[#allocation41_spill]] %s3212_s2 }
   0x2   :  { %3230 = sst [smem:[#allocation42_spill]] %s3213_s3 }
   0x3   :  { %3231 = sst [smem:[#allocation43_spill]] %s3216_s6 }
   0x4   :  { %17 = vsyncpa [#allocation7], 0 }
   0x5   :  { %19 = vsyncpa [#allocation7 + $0x1], 0 }
   0x6   :  { %20 = vsyncpa [#allocation10], 0 }
   0x7   :  { %21 = vsyncpa [#allocation13], 0 }
   0x8   :  { %22 = vsyncpa [#allocation8], 0 }
   0x9   :  { %23 = vsyncpa [#allocation16], 0  ;;  %s2739_s17 = smov 0   ;;  %s2741_s18 = smov 0  }
   0xa   :  { %s2743_s19 = smov 0   ;;  %s2745_s20 = smov 0  }
   0xb   :  { %s2747_s21 = smov 0   ;;  %s2749_s22 = smov 0  }
   0xc LB: > { %s3222_s23 = sadd.s32 4294967295, %s2647_s22   ;;  %p89_p0 = scmp.ne.s32.totalorder %s2631_s18, %s2627_s17  ;;  %s2647_s22 = sphi %s2749_s22, %s29_s22   ;;  %s2643_s21 = sphi %s2747_s21, %s3286_s21   ;;  %s2639_s20 = sphi %s2745_s20, %s3285_s20   ;;  %s2635_s19 = sphi %s2743_s19, %s3284_s19   ;;  %s2631_s18 = sphi %s2741_s18, %s3283_s18   ;;  %s2627_s17 = sphi %s2739_s17, %s3282_s17  }
   0xd   : > { %p2771_p1 = scmp.eq.s32.totalorder %s3222_s23, 0  ;;  %p1841_p2 = scmp.ge.s32.totalorder %s2647_s22, 1 }
   0xe   : > { %p330_p3 = scmp.lt.s32.totalorder %s2647_s22, 4  ;;  %s2661_s27 = smov [#allocation9]  }
   0xf   : > { %p2779_p4 = por %p2771_p1, %p89_p0  ;;  %s351_s28 = sshll.u32 %s2661_s27, 4  ;;  %s352_s28 = int_to_ptr.vmem [resolvable:$true] %s351_s28 }
  0x10   : > { %p2783_p5 = pnand %p1841_p2, %p330_p3  ;;  %s2662_s30 = smov [#allocation11]  }
  0x11   : > { %s364_s12 = sshll.u32 %s2662_s30, 4  ;;  %s2663_s13 = smov [#allocation12]   ;;  %s365_s12 = int_to_ptr.vmem [resolvable:$true] %s364_s12 }
  0x12   : > { %p2192_p6 = pneg %p2783_p5  ;;  %s383_s14 = sshll.u32 %s2663_s13, 4  ;;  %s384_s14 = int_to_ptr.vmem [resolvable:$true] %s383_s14 }
  0x13   : > { %s2402_s15 = scalar_lea.vmem %s352_s28, 3072  ;;  %p2410_p12 = scmp.lt.s32.totalorder %s352_s28, %s352_s28 }
  0x14   : > { %p2791_p7 = pnand %p2192_p6, %p2771_p1  ;;  %p2403_p9 = scmp.ne.s32.totalorder %s352_s28, %s2402_s15 }
  0x15   : > { %p2411_p13 = scmp.lt.s32.totalorder %s2402_s15, %s2402_s15 }
  0x16   : > { %p2393_p8 = pneg %p2791_p7 }
  0x17   : > { %p2412_p0 = por %p2411_p13, %p2410_p12 }
  0x18   : > { %p2405_p10 = pnand %p2403_p9, %p2393_p8 }
  0x1a   : > { %p2406_p11 = pneg %p2405_p10 }
  0x1c   : > { %p2413_p2 = pnand %p2412_p0, %p2406_p11 }
  0x1e   : > { %2416 = shalt.err (!%p2413_p2)
}
  0x1f   : > { %s3223_s16 = smov 64   ;;  %s3224_s17 = smov 4  }
  0x20   : > { %s3236_s2 = sld [smem:[#allocation41_spill]]  ;;  %s2428_s13 = scalar_lea.vmem %s365_s12, 3072 }
  0x21   : > { %p2429_p3 = scmp.ne.s32.totalorder %s365_s12, %s2428_s13  ;;  %p2436_p10 = scmp.lt.s32.totalorder %s365_s12, %s365_s12 }
  0x22   : > { %p2437_p11 = scmp.lt.s32.totalorder %s2428_s13, %s2428_s13 }
  0x23   : > { %p2431_p6 = pnand %p2429_p3, %p2393_p8 }
  0x24   : > { %p2438_p12 = por %p2437_p11, %p2436_p10 }
  0x25   : > { %p2432_p9 = pneg %p2431_p6 }
  0x26   : > { %2195 = dma.hbm_to_vmem [thread:$0]  (!%p2791_p7), %s3236_s2, 3072, %s352_s28, [#allocation10], %s3223_s16, %s3223_s16, %s3224_s17  }
  0x27   : > { %p2439_p13 = pnand %p2438_p12, %p2432_p9 }
  0x29   : > { %2442 = shalt.err (!%p2439_p13)
}
  0x2a   : > { %s3237_s3 = sld [smem:[#allocation42_spill]]  ;;  %s2454_s28 = scalar_lea.vmem %s384_s14, 2048 }
  0x2b   : > { %p2455_p0 = scmp.ne.s32.totalorder %s384_s14, %s2454_s28  ;;  %p2462_p6 = scmp.lt.s32.totalorder %s384_s14, %s384_s14 }
  0x2c   : > { %p2463_p9 = scmp.lt.s32.totalorder %s2454_s28, %s2454_s28 }
  0x2d   : > { %p2457_p2 = pnand %p2455_p0, %p2393_p8 }
  0x2e   : > { %p2464_p10 = por %p2463_p9, %p2462_p6 }
  0x2f   : > { %p2458_p3 = pneg %p2457_p2 }
  0x30   : > { %2198 = dma.hbm_to_vmem [thread:$0]  (!%p2791_p7), %s3237_s3, 3072, %s365_s12, [#allocation10], %s3223_s16, %s3223_s16, %s3224_s17  }
  0x31   : > { %p2465_p11 = pnand %p2464_p10, %p2458_p3 }
  0x33   : > { %2468 = shalt.err (!%p2465_p11)
}
  0x34   : > { %s2666_s27 = smov 128   ;;  %s2667_s23 = smov 8  }
  0x35   : > { %s3238_s6 = sld [smem:[#allocation43_spill]]  ;;  %s38_s13 = sadd.s32 1, %s2643_s21 }
  0x36   : > { %p83_p8 = scmp.ne.s32.totalorder %s2635_s19, %s2631_s18  ;;  %p39_p12 = scmp.ge.s32.totalorder %s38_s13, 3 }
  0x37   : > { %p84_p13 = scmp.eq.s32.totalorder %s2647_s22, 0  ;;  %s76_s15 = sadd.s32 1, %s2635_s19 }
  0x38   : > { %s409_s28 = sand.u32 1, %s2635_s19   ;;  %s3288_s13 = smov (%p39_p12, %s38_s13), 0 }
  0x39   : > { %3239 = sst [smem:[#allocation23_spill]] %s3288_s13  ;;  %p85_p0 = por %p84_p13, %p83_p8 }
  0x3a   : > { %p2209_p2 = scmp.lt.s32.totalorder %s2647_s22, 3  ;;  %s71_s16 = ssub.s32 %s2643_s21, %s3288_s13 }
  0x3b   : > { %2201 = dma.hbm_to_vmem [thread:$0]  (!%p2791_p7), %s3238_s6, 2048, %s384_s14, [#allocation13], %s2666_s27, %s2666_s27, %s2667_s23  }
  0x3c   : > { %s1848_s17 = sshll.u32 %s409_s28, 5  ;;  %p74_p3 = scmp.eq.s32.totalorder %s71_s16, 0 }
  0x3d   : > { %s1954_s29 = sshll.u32 %s2643_s21, 9  ;;  %s413_s2 = scalar_lea.vmem [#allocation6], %s1848_s17 }
  0x3e   : > { %s423_s3 = sshll.u32 %s413_s2, 4  ;;  %s422_s23 = scalar_lea.hbm %s3211_s1, %s1954_s29  ;;  %s424_s3 = int_to_ptr.vmem [resolvable:$true] %s423_s3 }
  0x3f   : > { %s2840_s12 = scalar_select %p74_p3, %s2635_s19, %s76_s15  }
  0x40   : > { %p2845_p7 = pnand %p2209_p2, %p85_p0  ;;  %s410_s6 = scalar_lea.sflag [#allocation7], %s409_s28 }
  0x41   : > { %s2482_s13 = scalar_lea.vmem %s424_s3, 512  ;;  %s2668_s2 = smov [#allocation6]  }
  0x42   : > { %p2471_p6 = pneg %p2845_p7  ;;  %p2483_p9 = scmp.ne.s32.totalorder %s424_s3, %s2482_s13 }
  0x43   : > { %s2487_s16 = sshll.u32 %s2668_s2, 4  ;;  %s2488_s16 = int_to_ptr.vmem [resolvable:$false] %s2487_s16 }
  0x44   : > { %p2485_p10 = pnand %p2483_p9, %p2471_p6  ;;  %s2489_s17 = scalar_lea.vmem %s2488_s16, 1024 }
  0x45   : > { %p2490_p8 = scmp.lt.s32.totalorder %s424_s3, %s2488_s16  ;;  %p2491_p12 = scmp.lt.s32.totalorder %s2489_s17, %s2482_s13 }
  0x46   : > { %p2486_p11 = pneg %p2485_p10 }
  0x47   : > { %p2492_p13 = por %p2491_p12, %p2490_p8 }
  0x49   : > { %p2493_p3 = pnand %p2492_p13, %p2486_p11 }
  0x4b   : > { %2496 = shalt.err (!%p2493_p3)
}
  0x4c   : > { %s3241_s15 = smov 4   ;;  %s3242_s29 = smov 64  }
  0x4d   : > { %2205 = dma.hbm_to_vmem [thread:$0]  (!%p2845_p7), %s422_s23, 512, %s424_s3, %s410_s6, %s3242_s29, %s3242_s29, %s3241_s15  }
  0x4e   : > { %435 = sbr.rel (%p2783_p5) target bundleno = 965 (0x3c5), region = 56 }
  0x53   : > { %s437_s28 = sand.u32 1, %s2631_s18  }
  0x54   : > { %s1853_s14 = sshll.u32 %s437_s28, 5  ;;  %s438_s27 = scalar_lea.sflag [#allocation7], %s437_s28 }
  0x55   : > { %s2859_s2 = scalar_lea.vmem [#allocation6], %s1853_s14 }
  0x56   : > { %2606 = dma.done.wait (%p2779_p4), %s438_s27, 512  }
  0x57   : > { %2608 = vsyncadd (%p2779_p4), %s438_s27, 4294966784 }
  0x58   : > { %2610 = dma.done.wait (%p2771_p1), [#allocation10], 6144  }
  0x59   : > { %2612 = vsyncadd (%p2771_p1), [#allocation10], 4294961152 }
  0x5a   : > { %2614 = dma.done.wait (%p2771_p1), [#allocation13], 2048  }
  0x5b   : > { %2616 = vsyncadd (%p2771_p1), [#allocation13], 4294965248  ;;  %p1857_p5 = scmp.ne.s32.totalorder %s2639_s20, 0 }
  0x5d   : > { %518 = sbr.rel (%p1857_p5) target bundleno = 100 (0x64), region = 76 }
  0x62   : > { %v2669_v0 = vmov 0.0  }
  0x63   : > { %519 = vst [vmem:[#allocation2] sm:$0xff] %v2669_v0  ;;  %520 = vst [vmem:[#allocation2 + $0x8] sm:$0xff] %v2669_v0 }
  0x64 PF: > { %v2308_v1 = vld [vmem:[#allocation9 + $0x38] sm:$0xff]   ;;  %v2310_v3 = vld [vmem:[#allocation9 + $0x30] sm:$0xff]   ;;  %v2312_v5 = vld [vmem:[#allocation9 + $0x28] sm:$0xff]   ;;  %s3018_s3 = smov 0  }
  0x65   : > { %v2309_v2 = vld [vmem:[#allocation9 + $0x78] sm:$0xff]   ;;  %2018 = vmatprep.subr.bf16.mxu0 %v2308_v1  ;;  %v2311_v4 = vld [vmem:[#allocation9 + $0x70] sm:$0xff]   ;;  %v2313_v6 = vld [vmem:[#allocation9 + $0x68] sm:$0xff]  }
  0x66   : > { %2042 = vmatprep.subr.bf16.mxu1 %v2309_v2  ;;  %2019 = vmatpush3.bf16.msra.mxu0 %v2308_v1  ;;  %v2314_v7 = vld [vmem:[#allocation9 + $0x20] sm:$0xff]   ;;  %v2316_v9 = vld [vmem:[#allocation9 + $0x18] sm:$0xff]   ;;  %v2318_v11 = vld [vmem:[#allocation9 + $0x10] sm:$0xff]  }
  0x67   : > { %2043 = vmatpush3.bf16.msra.mxu1 %v2309_v2  ;;  %2020 = vmatprep.subr.bf16.mxu0 %v2310_v3  ;;  %v2315_v8 = vld [vmem:[#allocation9 + $0x60] sm:$0xff]   ;;  %v2317_v10 = vld [vmem:[#allocation9 + $0x58] sm:$0xff]   ;;  %v2319_v13 = vld [vmem:[#allocation9 + $0x50] sm:$0xff]  }
  0x68   : > { %2044 = vmatprep.subr.bf16.mxu1 %v2311_v4  ;;  %v2324_v12 = vld [vmem:[%s2859_s2] sm:$0xff]   ;;  %v2320_v14 = vld [vmem:[#allocation9 + $0x8] sm:$0xff]   ;;  %v2326_v18 = vld [vmem:[#allocation9 + $0xb8] sm:$0xff]  }
  0x69   : > { %2034 = vmatprep.mubr.bf16.mxu0 %v2324_v12  ;;  %2058 = vmatprep.mubr.bf16.mxu1 %v2324_v12  ;;  %v2321_v15 = vld [vmem:[#allocation9 + $0x48] sm:$0xff]   ;;  %v2322_v16 = vld [vmem:[#allocation9] sm:$0xff]   ;;  %v2327_v20 = vld [vmem:[#allocation9 + $0xb0] sm:$0xff]  }
  0x6a   : > { %2021 = vmatpush3.bf16.msra.mxu0 %v2310_v3  ;;  %v2323_v17 = vld [vmem:[#allocation9 + $0x40] sm:$0xff]   ;;  %v2325_v19 = vld [vmem:[%s2859_s2 + $0x8] sm:$0xff]   ;;  %v2331_v21 = vld [vmem:[%s2859_s2 + $0x10] sm:$0xff]  }
  0x6b   : > { %2045 = vmatpush3.bf16.msra.mxu1 %v2311_v4  ;;  %2022 = vmatprep.subr.bf16.mxu0 %v2312_v5  ;;  %v2328_v22 = vld [vmem:[#allocation9 + $0xa8] sm:$0xff]   ;;  %v2332_v23 = vld [vmem:[%s2859_s2 + $0x18] sm:$0xff]   ;;  %v2329_v24 = vld [vmem:[#allocation9 + $0xa0] sm:$0xff]  }
  0x6c   : > { %2046 = vmatprep.subr.bf16.mxu1 %v2313_v6  ;;  %v2330_v25 = vld [vmem:[#allocation9 + $0x98] sm:$0xff]   ;;  %v2333_v26 = vld [vmem:[#allocation9 + $0x90] sm:$0xff]   ;;  %v2334_v27 = vld [vmem:[#allocation9 + $0x88] sm:$0xff]  }
  0x6d   : > { %v2335_v28 = vld [vmem:[#allocation9 + $0x80] sm:$0xff]   ;;  %v2886_v30 = vld [vmem:[%s3210_s0 + $0x8] sm:$0xff]  ;;  %v2896_v35 = vld [vmem:[#allocation11 + $0x10] sm:$0xf] }
  0x6e   : > { %2023 = vmatpush3.bf16.msra.mxu0 %v2312_v5  ;;  %v2881_v29 = vld [vmem:[%s3210_s0] sm:$0xff]  ;;  %v2892_v33 = vld [vmem:[#allocation11 + $0x8] sm:$0xf]  ;;  %v2894_v34 = vld [vmem:[#allocation11 + $0xc] sm:$0xf] }
  0x6f   : > { %2047 = vmatpush3.bf16.msra.mxu1 %v2313_v6  ;;  %2024 = vmatprep.subr.bf16.mxu0 %v2314_v7  ;;  %v2888_v31 = vld [vmem:[#allocation11] sm:$0xf]  ;;  %v2890_v32 = vld [vmem:[#allocation11 + $0x4] sm:$0xf]  ;;  %v2898_v36 = vld [vmem:[#allocation11 + $0x14] sm:$0xf] }
  0x70   : > { %2048 = vmatprep.subr.bf16.mxu1 %v2315_v8  ;;  %v2900_v37 = vld [vmem:[#allocation11 + $0x18] sm:$0xf]  ;;  %v2902_v38 = vld [vmem:[#allocation11 + $0x1c] sm:$0xf]  ;;  %v2904_v39 = vld [vmem:[#allocation11 + $0x20] sm:$0xf] }
  0x71   : > { %v2906_v40 = vld [vmem:[#allocation11 + $0x24] sm:$0xf]  ;;  %v2908_v41 = vld [vmem:[#allocation11 + $0x28] sm:$0xf]  ;;  %v2910_v42 = vld [vmem:[#allocation11 + $0x2c] sm:$0xf] }
  0x72   : > { %2025 = vmatpush3.bf16.msra.mxu0 %v2314_v7  ;;  %v2912_v43 = vld [vmem:[#allocation11 + $0x30] sm:$0xf]  ;;  %v2914_v44 = vld [vmem:[#allocation11 + $0x34] sm:$0xf]  ;;  %v2916_v45 = vld [vmem:[#allocation11 + $0x38] sm:$0xf] }
  0x73   : > { %2049 = vmatpush3.bf16.msra.mxu1 %v2315_v8  ;;  %2026 = vmatprep.subr.bf16.mxu0 %v2316_v9  ;;  %v2918_v46 = vld [vmem:[#allocation11 + $0x3c] sm:$0xf]  ;;  %v2920_v47 = vld [vmem:[#allocation11 + $0x40] sm:$0xf]  ;;  %v2922_v48 = vld [vmem:[#allocation11 + $0x44] sm:$0xf] }
  0x74   : > { %2050 = vmatprep.subr.bf16.mxu1 %v2317_v10  ;;  %v2924_v49 = vld [vmem:[#allocation11 + $0x48] sm:$0xf]  ;;  %v2926_v50 = vld [vmem:[#allocation11 + $0x4c] sm:$0xf]  ;;  %v2928_v51 = vld [vmem:[#allocation11 + $0x50] sm:$0xf] }
  0x75   : > { %v2930_v52 = vld [vmem:[#allocation11 + $0x54] sm:$0xf]  ;;  %v2932_v53 = vld [vmem:[#allocation11 + $0x58] sm:$0xf]  ;;  %v2934_v54 = vld [vmem:[#allocation11 + $0x5c] sm:$0xf] }
  0x76   : > { %2027 = vmatpush3.bf16.msra.mxu0 %v2316_v9  ;;  %v2936_v55 = vld [vmem:[#allocation11 + $0x60] sm:$0xf]  ;;  %v2938_v56 = vld [vmem:[#allocation11 + $0x64] sm:$0xf]  ;;  %v2940_v57 = vld [vmem:[#allocation11 + $0x68] sm:$0xf] }
  0x77   : > { %2051 = vmatpush3.bf16.msra.mxu1 %v2317_v10  ;;  %2028 = vmatprep.subr.bf16.mxu0 %v2318_v11  ;;  %v2942_v58 = vld [vmem:[#allocation11 + $0x6c] sm:$0xf]  ;;  %v2944_v59 = vld [vmem:[#allocation11 + $0x70] sm:$0xf]  ;;  %v2946_v60 = vld [vmem:[#allocation11 + $0x74] sm:$0xf] }
  0x78   : > { %2052 = vmatprep.subr.bf16.mxu1 %v2319_v13  ;;  %v2948_v61 = vld [vmem:[#allocation11 + $0x78] sm:$0xf]  ;;  %v2950_v62 = vld [vmem:[#allocation11 + $0x7c] sm:$0xf]  ;;  %v2952_v63 = vld [vmem:[#allocation11 + $0x80] sm:$0xf] }
  0x79   : > { %3243 = vst [vmem:[#allocation24_spill] sm:$0xff] %v2952_v63  ;;  %v2954_v0 = vld [vmem:[#allocation11 + $0x84] sm:$0xf]  ;;  %v2956_v1 = vld [vmem:[#allocation11 + $0x88] sm:$0xf] }
  0x7a   : > { %2029 = vmatpush3.bf16.msra.mxu0 %v2318_v11  ;;  %3244 = vst [vmem:[#allocation25_spill] sm:$0xff] %v2954_v0  ;;  %3245 = vst [vmem:[#allocation26_spill] sm:$0xff] %v2956_v1  ;;  %v2958_v2 = vld [vmem:[#allocation11 + $0x8c] sm:$0xf]  ;;  %v2960_v3 = vld [vmem:[#allocation11 + $0x90] sm:$0xf] }
  0x7b   : > { %2053 = vmatpush3.bf16.msra.mxu1 %v2319_v13  ;;  %2030 = vmatprep.subr.bf16.mxu0 %v2320_v14  ;;  %3246 = vst [vmem:[#allocation27_spill] sm:$0xff] %v2958_v2  ;;  %3247 = vst [vmem:[#allocation28_spill] sm:$0xff] %v2960_v3  ;;  %v2962_v4 = vld [vmem:[#allocation11 + $0x94] sm:$0xf]  ;;  %v2964_v5 = vld [vmem:[#allocation11 + $0x98] sm:$0xf] }
  0x7c   : > { %2054 = vmatprep.subr.bf16.mxu1 %v2321_v15  ;;  %3248 = vst [vmem:[#allocation29_spill] sm:$0xff] %v2962_v4  ;;  %3249 = vst [vmem:[#allocation30_spill] sm:$0xff] %v2964_v5  ;;  %v2966_v6 = vld [vmem:[#allocation11 + $0x9c] sm:$0xf]  ;;  %v2968_v7 = vld [vmem:[#allocation11 + $0xa0] sm:$0xf] }
  0x7d   : > { %3250 = vst [vmem:[#allocation31_spill] sm:$0xff] %v2966_v6  ;;  %3251 = vst [vmem:[#allocation32_spill] sm:$0xff] %v2968_v7  ;;  %v2970_v8 = vld [vmem:[#allocation11 + $0xa4] sm:$0xf]  ;;  %v2972_v9 = vld [vmem:[#allocation11 + $0xa8] sm:$0xf] }
  0x7e   : > { %2031 = vmatpush3.bf16.msra.mxu0 %v2320_v14  ;;  %3252 = vst [vmem:[#allocation33_spill] sm:$0xff] %v2970_v8  ;;  %3253 = vst [vmem:[#allocation34_spill] sm:$0xff] %v2972_v9  ;;  %v2974_v10 = vld [vmem:[#allocation11 + $0xac] sm:$0xf]  ;;  %v2976_v11 = vld [vmem:[#allocation11 + $0xb0] sm:$0xf] }
  0x7f   : > { %2055 = vmatpush3.bf16.msra.mxu1 %v2321_v15  ;;  %2032 = vmatprep.subr.bf16.mxu0 %v2322_v16  ;;  %3254 = vst [vmem:[#allocation35_spill] sm:$0xff] %v2974_v10  ;;  %3255 = vst [vmem:[#allocation36_spill] sm:$0xff] %v2976_v11  ;;  %v2980_v13 = vld [vmem:[#allocation11 + $0xb8] sm:$0xf]  ;;  %v2982_v14 = vld [vmem:[#allocation11 + $0xbc] sm:$0xf] }
  0x80   : > { %2056 = vmatprep.subr.bf16.mxu1 %v2323_v17  ;;  %v2987_v15 = vld [vmem:[%s3215_s5] ss:$0 sm:$0xff] }
  0x81   : > { %3257 = vst [vmem:[#allocation38_spill] sm:$0xff] %v2987_v15 }
  0x82   : > { %2033 = vmatpush3.bf16.msra.mxu0 %v2322_v16  ;;  %v2992_v16 = vld [vmem:[%s3215_s5 + $0x1] ss:$0 sm:$0xff] }
  0x83   : > { %2057 = vmatpush3.bf16.msra.mxu1 %v2323_v17  ;;  %2066 = vmatprep.subr.bf16.mxu0 %v2326_v18  ;;  %3258 = vst [vmem:[#allocation39_spill] sm:$0xff] %v2992_v16  ;;  %v2997_v17 = vld [vmem:[%s3215_s5 + $0x2] ss:$0 sm:$0xff] }
  0x84   : > { %2150 = vmatprep.subr.bf16.mxu1 %v2326_v18  ;;  %3259 = vst [vmem:[#allocation40_spill] sm:$0xff] %v2997_v17 }
  0x85   : > { %2035 = vmatmul.mubr.bf16.vlgmr.msra.gmra.mxu0 %v2325_v19 }
  0x86   : > { %2059 = vmatmul.mubr.bf16.vlgmr.msra.gmra.mxu1 %v2325_v19  ;;  %2067 = vmatpush3.bf16.msra.mxu0 %v2326_v18 }
  0x87   : > { %2158 = vmatpush3.bf16.msra.mxu1 %v2326_v18  ;;  %2068 = vmatprep.subr.bf16.mxu0 %v2327_v20  ;;  %v2999_v18 = vld [vmem:[#allocation2] sm:$0xff]  }
  0x88   : > { %2151 = vmatprep.subr.bf16.mxu1 %v2327_v20  ;;  %2038 = vmatprep.mubr.bf16.mxu0 %v2331_v21 }
  0x89   : > { %2062 = vmatprep.mubr.bf16.mxu1 %v2331_v21 }
  0x8a   : > { %2069 = vmatpush3.bf16.msra.mxu0 %v2327_v20 }
  0x8b   : > { %2159 = vmatpush3.bf16.msra.mxu1 %v2327_v20  ;;  %2070 = vmatprep.subr.bf16.mxu0 %v2328_v22  ;;  %v1870_v20 = vld [vmem:[%s3214_s4] ss:$0 sm:$0xff] }
  0x8c   : > { %2152 = vmatprep.subr.bf16.mxu1 %v2328_v22 }
  0x8d   : > { %2039 = vmatmul.mubr.bf16.gmra.mxu0 %v2332_v23 }
  0x8e   : > { %2071 = vmatpush3.bf16.msra.mxu0 %v2328_v22  ;;  %2063 = vmatmul.mubr.bf16.gmra.mxu1 %v2332_v23 }
  0x8f   : > { %2160 = vmatpush3.bf16.msra.mxu1 %v2328_v22  ;;  %2072 = vmatprep.subr.bf16.mxu0 %v2329_v24 }
  0x90   : > { %2153 = vmatprep.subr.bf16.mxu1 %v2329_v24  ;;  %2082 = vmatprep.mubr.bf16.mxu0 %v2324_v12  ;;  %v2978_v12 = vld [vmem:[#allocation11 + $0xb4] sm:$0xf] }
  0x91   : > { %2086 = vmatprep.mubr.bf16.mxu1 %v2331_v21  ;;  %3256 = vst [vmem:[#allocation37_spill] sm:$0xff] %v2978_v12  ;;  %v1880_v21 = vld [vmem:[%s3214_s4 + $0x1] ss:$0 sm:$0xff] }
  0x92   : > { %2073 = vmatpush3.bf16.msra.mxu0 %v2329_v24 }
  0x93   : > { %2161 = vmatpush3.bf16.msra.mxu1 %v2329_v24  ;;  %2074 = vmatprep.subr.bf16.mxu0 %v2330_v25 }
  0x94   : > { %2154 = vmatprep.subr.bf16.mxu1 %v2330_v25 }
  0x96   : > { %2075 = vmatpush3.bf16.msra.mxu0 %v2330_v25 }
  0x97   : > { %2162 = vmatpush3.bf16.msra.mxu1 %v2330_v25  ;;  %2076 = vmatprep.subr.bf16.mxu0 %v2333_v26 }
  0x98   : > { %2155 = vmatprep.subr.bf16.mxu1 %v2333_v26 }
  0x9a   : > { %2077 = vmatpush3.bf16.msra.mxu0 %v2333_v26 }
  0x9b   : > { %2163 = vmatpush3.bf16.msra.mxu1 %v2333_v26  ;;  %2078 = vmatprep.subr.bf16.mxu0 %v2334_v27 }
  0x9c   : > { %2156 = vmatprep.subr.bf16.mxu1 %v2334_v27 }
  0x9e   : > { %2079 = vmatpush3.bf16.msra.mxu0 %v2334_v27 }
  0x9f   : > { %2164 = vmatpush3.bf16.msra.mxu1 %v2334_v27  ;;  %2080 = vmatprep.subr.bf16.mxu0 %v2335_v28 }
  0xa0   : > { %2157 = vmatprep.subr.bf16.mxu1 %v2335_v28 }
  0xa2   : > { %2081 = vmatpush3.bf16.msra.mxu0 %v2335_v28 }
  0xa3   : > { %2165 = vmatpush3.bf16.msra.mxu1 %v2335_v28 }
  0xa5   : > { %2083 = vmatmul.mubr.bf16.vlgmr.msra.gmra.mxu0 %v2325_v19  ;;  %v3001_v19 = vld [vmem:[#allocation2 + $0x8] sm:$0xff]  }
  0xa6   : > { %2087 = vmatmul.mubr.bf16.vlgmr.msra.gmra.mxu1 %v2332_v23 }
 0x145   : > { %v2036_v22 = vpop.f32.mrf.mxu0 }
 0x146   : > { %v691_v23 = vadd.f32 %v2036_v22, %v1870_v20  ;;  %v2060_v24 = vpop.f32.mrf.mxu1 }
 0x147   : > { %v845_v25 = vadd.f32 %v2060_v24, %v1880_v21  ;;  %v651_v26 = vpop.f32.mrf.mxu0 }
 0x148   : > { %699 = vst [vmem:[#allocation3 + $0x10] sm:$0xff] %v691_v23  ;;  %v689_v27 = vadd.f32 %v1870_v20, %v651_v26  ;;  %v804_v28 = vpop.f32.mrf.mxu1 }
 0x149   : > { %853 = vst [vmem:[#allocation4 + $0x10] sm:$0xff] %v845_v25  ;;  %v843_v17 = vadd.f32 %v1880_v21, %v804_v28  ;;  %v2037_v16 = vpop.f32.mrf.mxu0 }
 0x14a   : > { %697 = vst [vmem:[#allocation3] sm:$0xff] %v689_v27  ;;  %v692_v15 = vadd.f32 %v2037_v16, %v1870_v20  ;;  %v2061_v63 = vpop.f32.mrf.mxu1 }
 0x14b   : > { %851 = vst [vmem:[#allocation4] sm:$0xff] %v843_v17  ;;  %v846_v0 = vadd.f32 %v2061_v63, %v1880_v21  ;;  %v654_v1 = vpop.f32.mrf.mxu0 }
 0x14c   : > { %700 = vst [vmem:[#allocation3 + $0x18] sm:$0xff] %v692_v15  ;;  %v690_v2 = vadd.f32 %v1870_v20, %v654_v1  ;;  %v807_v3 = vpop.f32.mrf.mxu1 }
 0x14d   : > { %854 = vst [vmem:[#allocation4 + $0x18] sm:$0xff] %v846_v0  ;;  %v844_v22 = vadd.f32 %v1880_v21, %v807_v3  ;;  %v2040_v4 = vpop.f32.mrf.mxu0 }
 0x14e   : > { %698 = vst [vmem:[#allocation3 + $0x8] sm:$0xff] %v690_v2  ;;  %v695_v24 = vadd.f32 %v2040_v4, %v1870_v20  ;;  %v2064_v23 = vpop.f32.mrf.mxu1 }
 0x14f   : > { %852 = vst [vmem:[#allocation4 + $0x8] sm:$0xff] %v844_v22  ;;  %v849_v26 = vadd.f32 %v2064_v23, %v1880_v21  ;;  %v667_v25 = vpop.f32.mrf.mxu0  ;;  %v1890_v22 = vld [vmem:[%s3214_s4 + $0x2] ss:$0 sm:$0xff] }
 0x150   : > { %703 = vst [vmem:[#allocation3 + $0x30] sm:$0xff] %v695_v24  ;;  %v693_v28 = vadd.f32 %v1870_v20, %v667_v25  ;;  %v820_v27 = vpop.f32.mrf.mxu1 }
 0x151   : > { %857 = vst [vmem:[#allocation4 + $0x30] sm:$0xff] %v849_v26  ;;  %v847_v16 = vadd.f32 %v1880_v21, %v820_v27  ;;  %v2041_v17 = vpop.f32.mrf.mxu0 }
 0x152   : > { %701 = vst [vmem:[#allocation3 + $0x20] sm:$0xff] %v693_v28  ;;  %v696_v63 = vadd.f32 %v2041_v17, %v1870_v20  ;;  %v2065_v15 = vpop.f32.mrf.mxu1 }
 0x153   : > { %855 = vst [vmem:[#allocation4 + $0x20] sm:$0xff] %v847_v16  ;;  %v850_v1 = vadd.f32 %v2065_v15, %v1880_v21  ;;  %v670_v0 = vpop.f32.mrf.mxu0 }
 0x154   : > { %704 = vst [vmem:[#allocation3 + $0x38] sm:$0xff] %v696_v63  ;;  %v694_v3 = vadd.f32 %v1870_v20, %v670_v0  ;;  %v823_v2 = vpop.f32.mrf.mxu1 }
 0x155   : > { %858 = vst [vmem:[#allocation4 + $0x38] sm:$0xff] %v850_v1  ;;  %v848_v4 = vadd.f32 %v1880_v21, %v823_v2 }
 0x156   : > { %702 = vst [vmem:[#allocation3 + $0x28] sm:$0xff] %v694_v3 }
 0x157   : > { %856 = vst [vmem:[#allocation4 + $0x28] sm:$0xff] %v848_v4 }
 0x165   : > { %v2084_v24 = vpop.f32.mrf.mxu0 }
 0x166   : > { %v999_v23 = vadd.f32 %v2084_v24, %v1890_v22  ;;  %v2088_v26 = vpop.f32.mrf.mxu1 }
 0x167   : > { %v1003_v25 = vadd.f32 %v2088_v26, %v1890_v22  ;;  %v958_v28 = vpop.f32.mrf.mxu0 }
 0x168   : > { %1007 = vst [vmem:[#allocation5 + $0x10] sm:$0xff] %v999_v23  ;;  %v997_v27 = vadd.f32 %v1890_v22, %v958_v28  ;;  %v974_v16 = vpop.f32.mrf.mxu1 }
 0x169   : > { %1011 = vst [vmem:[#allocation5 + $0x30] sm:$0xff] %v1003_v25  ;;  %v1001_v17 = vadd.f32 %v1890_v22, %v974_v16  ;;  %v2085_v20 = vpop.f32.mrf.mxu0 }
 0x16a   : > { %1005 = vst [vmem:[#allocation5] sm:$0xff] %v997_v27  ;;  %v1000_v63 = vadd.f32 %v2085_v20, %v1890_v22  ;;  %v2089_v21 = vpop.f32.mrf.mxu1 }
 0x16b   : > { %1009 = vst [vmem:[#allocation5 + $0x20] sm:$0xff] %v1001_v17  ;;  %v1004_v15 = vadd.f32 %v2089_v21, %v1890_v22  ;;  %v961_v1 = vpop.f32.mrf.mxu0 }
 0x16c   : > { %1008 = vst [vmem:[#allocation5 + $0x18] sm:$0xff] %v1000_v63  ;;  %v998_v0 = vadd.f32 %v1890_v22, %v961_v1  ;;  %v977_v3 = vpop.f32.mrf.mxu1 }
 0x16d   : > { %1012 = vst [vmem:[#allocation5 + $0x38] sm:$0xff] %v1004_v15  ;;  %v1002_v2 = vadd.f32 %v1890_v22, %v977_v3 }
 0x16e   : > { %1006 = vst [vmem:[#allocation5 + $0x8] sm:$0xff] %v998_v0 }
 0x16f   : > { %1010 = vst [vmem:[#allocation5 + $0x28] sm:$0xff] %v1002_v2 }
 0x170 LB: >> { %v1901_v4 = vcombine.low %v2916_v45, %v2918_v46  ;;  %v2670_v22 = vmov 0.0   ;;  %v1910_v24 = vcombine.low %v2948_v61, %v2950_v62  ;;  %v1900_v23 = vcombine.low %v2912_v43, %v2914_v44  ;;  %s1925_s6 = sshll.u32 %s2639_s20, 2  ;;  %v3260_v12 = vld [vmem:[#allocation37_spill] sm:$0xff]  ;;  %v3261_v11 = vld [vmem:[#allocation36_spill] sm:$0xff]  ;;  %v3262_v10 = vld [vmem:[#allocation35_spill] sm:$0xff]  ;;  %s3116_s25 = sshll.u32 %s2659_s3, 4  ;;  %s2659_s3 = sphi %s3018_s3, %s1077_s3   ;;  %v2655_v18 = vphi %v2999_v18, %v3278_v18   ;;  %v2651_v19 = vphi %v3001_v19, %v3277_v19  }
 0x171   : >> { %2090 = vmatprep.subr.bf16.mxu0 %v2670_v22  ;;  %2110 = vmatprep.subr.bf16.mxu1 %v2670_v22  ;;  %v1909_v26 = vcombine.low %v2944_v59, %v2946_v60  ;;  %vm2671_vm0 = vmmov 0   ;;  %s1419_s24 = sadd.s32 %s2659_s3, %s1925_s6  ;;  %v1899_v25 = vcombine.low %v2908_v41, %v2910_v42  ;;  %v1908_v28 = vcombine.low %v2940_v57, %v2942_v58  ;;  %v3263_v9 = vld [vmem:[#allocation34_spill] sm:$0xff]  ;;  %v3264_v8 = vld [vmem:[#allocation33_spill] sm:$0xff]  ;;  %v3265_v7 = vld [vmem:[#allocation32_spill] sm:$0xff]  ;;  %s1367_s26 = scalar_lea.vmem [#allocation3], %s3116_s25 }
 0x172   : >> { %2091 = vmatpush3.bf16.msra.mxu0 %v1901_v4  ;;  %2111 = vmatpush3.bf16.msra.mxu1 %v1910_v24  ;;  %v2672_v27 = vmov 0   ;;  %v1420_v16 = vstv %s1419_s24  ;;  %v1898_v17 = vcombine.low %v2904_v39, %v2906_v40  ;;  %v1907_v21 = vcombine.low %v2936_v55, %v2938_v56  ;;  %v3266_v6 = vld [vmem:[#allocation31_spill] sm:$0xff]  ;;  %v3267_v5 = vld [vmem:[#allocation30_spill] sm:$0xff]  ;;  %s1370_s13 = scalar_lea.vmem [#allocation4], %s3116_s25  ;;  %s1373_s23 = scalar_lea.vmem [#allocation5], %s3116_s25 }
 0x173   : >> { %2092 = vmatprep.subr.bf16.mxu0 %v2670_v22  ;;  %2112 = vmatprep.subr.bf16.mxu1 %v2670_v22  ;;  %vm1421_vm1 = vcmp.lt.s32.totalorder %v1420_v16, %v2881_v29  ;;  %vm1422_vm2 = vcmp.lt.s32.totalorder %v1420_v16, %v2886_v30  ;;  %v1897_v3 = vcombine.low %v2900_v37, %v2902_v38  ;;  %s1077_s3 = sadd.s32 1, %s2659_s3  }
 0x174   : >> { %2106 = vmatprep.mubr.msk.bf16.mxu0 %vm2671_vm0, %v2670_v22  ;;  %2126 = vmatprep.mubr.msk.bf16.mxu1 %vm2671_vm0, %v2670_v22  ;;  %v1926_v20 = vsel %vm1421_vm1, 1.0, %v2670_v22  ;;  %v1927_v63 = vsel %vm1422_vm2, 1.0, %v2670_v22  ;;  %v1906_v2 = vcombine.low %v2932_v53, %v2934_v54  ;;  %v1896_v4 = vcombine.low %v2896_v35, %v2898_v36  ;;  %p1074_p1 = scmp.ge.s32.totalorder %s1077_s3, 4  }
 0x175   : >> { %2336 = vset.pattern.permute.xlu0 %v2672_v27  ;;  %2342 = vset.pattern.permute.xlu1 %v2672_v27  ;;  %v2337_v15 = vpack.i.bf16 %v1927_v63, %v1926_v20  ;;  %v1440_v1 = vsub.f32 1.0, %v1927_v63  ;;  %v1439_v0 = vsub.f32 1.0, %v1926_v20  ;;  %v1905_v24 = vcombine.low %v2928_v51, %v2930_v52  ;;  %p1928_p4 = scmp.ne.s32.totalorder (%p1074_p1), %s2639_s20, 2 }
 0x176   : >> { %2093 = vmatpush3.bf16.msra.mxu0 %v1900_v23  ;;  %2113 = vmatpush3.bf16.msra.mxu1 %v1909_v26  ;;  %v1895_v23 = vcombine.low %v2892_v33, %v2894_v34  ;;  %v1904_v26 = vcombine.low %v2924_v49, %v2926_v50  ;;  %v1080_v27 = vpack.c.bf16 %v2651_v19, %v2655_v18 }
 0x177   : >> { %2094 = vmatprep.subr.bf16.mxu0 %v2670_v22  ;;  %2114 = vmatprep.subr.bf16.mxu1 %v2670_v22  ;;  %v1919_v16 = vcombine.low %v2980_v13, %v2982_v14  ;;  %v1917_v20 = vcombine.low %v3263_v9, %v3262_v10  ;;  %v1916_v63 = vcombine.low %v3265_v7, %v3264_v8 }
 0x178   : >> { %2338 = vperm.xlu0 %2336, %v2337_v15   ;;  %1448 = vperm.xlu1 %2342, %v1440_v1   ;;  %v3268_v15 = vld [vmem:[#allocation29_spill] sm:$0xff]  ;;  %v3269_v1 = vld [vmem:[#allocation28_spill] sm:$0xff] }
 0x17a   : >> { %2095 = vmatpush3.bf16.msra.mxu0 %v1899_v25  ;;  %2115 = vmatpush3.bf16.msra.mxu1 %v1908_v28  ;;  %v1894_v25 = vcombine.low %v2888_v31, %v2890_v32  ;;  %v1903_v28 = vcombine.low %v2920_v47, %v2922_v48 }
 0x17b   : >> { %2096 = vmatprep.subr.bf16.mxu0 %v2670_v22  ;;  %2116 = vmatprep.subr.bf16.mxu1 %v2670_v22 }
 0x17c   : >> { %1443 = vperm.xlu0 %2336, %v1439_v0   ;;  %v1914_v0 = vcombine.low %v3269_v1, %v3268_v15  ;;  %v3275_v15 = vld [vmem:[#allocation39_spill] sm:$0xff] }
 0x17e   : >> { %2097 = vmatpush3.bf16.msra.mxu0 %v1898_v17  ;;  %2117 = vmatpush3.bf16.msra.mxu1 %v1907_v21  ;;  %v1918_v17 = vcombine.low %v3261_v11, %v3260_v12  ;;  %v1915_v21 = vcombine.low %v3267_v5, %v3266_v6 }
 0x17f   : >> { %2098 = vmatprep.subr.bf16.mxu0 %v2670_v22  ;;  %2118 = vmatprep.subr.bf16.mxu1 %v2670_v22 }
 0x182   : >> { %2099 = vmatpush3.bf16.msra.mxu0 %v1897_v3  ;;  %2119 = vmatpush3.bf16.msra.mxu1 %v1906_v2  ;;  %v3270_v3 = vld [vmem:[#allocation27_spill] sm:$0xff]  ;;  %v3271_v2 = vld [vmem:[#allocation26_spill] sm:$0xff] }
 0x183   : >> { %2100 = vmatprep.subr.bf16.mxu0 %v2670_v22  ;;  %2120 = vmatprep.subr.bf16.mxu1 %v2670_v22 }
 0x186   : >> { %2101 = vmatpush3.bf16.msra.mxu0 %v1896_v4  ;;  %2121 = vmatpush3.bf16.msra.mxu1 %v1905_v24  ;;  %v1913_v4 = vcombine.low %v3271_v2, %v3270_v3  ;;  %v3272_v24 = vld [vmem:[#allocation25_spill] sm:$0xff]  ;;  %v1369_v2 = vld [vmem:[%s1367_s26 + $0x8] sm:$0xff] }
 0x187   : >> { %2102 = vmatprep.subr.bf16.mxu0 %v2670_v22  ;;  %2122 = vmatprep.subr.bf16.mxu1 %v2670_v22 }
 0x18a   : >> { %2103 = vmatpush3.bf16.msra.mxu0 %v1895_v23  ;;  %2123 = vmatpush3.bf16.msra.mxu1 %v1904_v26  ;;  %v3273_v23 = vld [vmem:[#allocation24_spill] sm:$0xff] }
 0x18b   : >> { %2104 = vmatprep.subr.bf16.mxu0 %v2670_v22  ;;  %2124 = vmatprep.subr.bf16.mxu1 %v2670_v22  ;;  %v1912_v26 = vcombine.low %v3273_v23, %v3272_v24 }
 0x18e   : >> { %2105 = vmatpush3.bf16.msra.mxu0 %v1894_v25  ;;  %2125 = vmatpush3.bf16.msra.mxu1 %v1903_v28  ;;  %v1368_v28 = vld [vmem:[%s1367_s26] sm:$0xff] }
 0x18f   : >> { %2130 = vmatprep.subr.bf16.mxu0 %v2670_v22 }
 0x191   : >> { %2107 = vmatmul.mubr.bf16.vlgmr.msra.gmra.mxu0 %v1080_v27  ;;  %2127 = vmatmul.mubr.bf16.vlgmr.msra.gmra.mxu1 %v1080_v27 }
 0x192   : >> { %2131 = vmatpush3.bf16.msra.mxu0 %v1919_v16  ;;  %2146 = vmatprep.mubr.msk.bf16.mxu0 %vm2671_vm0, %v2670_v22  ;;  %v3274_v16 = vld [vmem:[#allocation38_spill] sm:$0xff] }
 0x193   : >> { %2132 = vmatprep.subr.bf16.mxu0 %v2670_v22 }
 0x196   : >> { %2133 = vmatpush3.bf16.msra.mxu0 %v1918_v17 }
 0x197   : >> { %2134 = vmatprep.subr.bf16.mxu0 %v2670_v22 }
 0x19a   : >> { %2135 = vmatpush3.bf16.msra.mxu0 %v1917_v20 }
 0x19b   : >> { %2136 = vmatprep.subr.bf16.mxu0 %v2670_v22 }
 0x19e   : >> { %2137 = vmatpush3.bf16.msra.mxu0 %v1916_v63 }
 0x19f   : >> { %2138 = vmatprep.subr.bf16.mxu0 %v2670_v22 }
 0x1a2   : >> { %2139 = vmatpush3.bf16.msra.mxu0 %v1915_v21 }
 0x1a3   : >> { %2140 = vmatprep.subr.bf16.mxu0 %v2670_v22 }
 0x1a6   : >> { %2141 = vmatpush3.bf16.msra.mxu0 %v1914_v0 }
 0x1a7   : >> { %2142 = vmatprep.subr.bf16.mxu0 %v2670_v22 }
 0x1aa   : >> { %2143 = vmatpush3.bf16.msra.mxu0 %v1913_v4 }
 0x1ab   : >> { %2144 = vmatprep.subr.bf16.mxu0 %v2670_v22  ;;  %v1371_v22 = vld [vmem:[%s1370_s13] sm:$0xff] }
 0x1ae   : >> { %2145 = vmatpush3.bf16.msra.mxu0 %v1912_v26 }
 0x1b1   : >> { %2147 = vmatmul.mubr.bf16.vlgmr.msra.gmra.mxu0 %v1080_v27 }
 0x251   : >> { %v1169_v25 = vpop.f32.mrf.mxu0  ;;  %v1264_v20 = vpop.f32.mrf.mxu1 }
 0x252   : >> { %v1170_v17 = vadd.f32 %v3274_v16, %v1169_v25  ;;  %v1265_v1 = vadd.f32 %v3275_v15, %v1264_v20 }
 0x253   : >> { %v2108_v63 = vpop.f32.mrf.mxu0  ;;  %v2128_v0 = vpop.f32.mrf.mxu1 }
 0x254   : >> { %v1376_v21 = vadd.f32 %v1368_v28, %v1170_v17  ;;  %v1390_v5 = vadd.f32 %v1371_v22, %v1265_v1  ;;  %v1372_v28 = vld [vmem:[%s1370_s13 + $0x8] sm:$0xff] }
 0x255   : >> { %v1172_v3 = vpop.f32.mrf.mxu0  ;;  %v1267_v24 = vpop.f32.mrf.mxu1 }
 0x256   : >> { %v1921_v27 = vmul.f32 -1.442695, %v1376_v21  ;;  %v1173_v4 = vadd.f32 %v3274_v16, %v1172_v3  ;;  %v1268_v25 = vadd.f32 %v3275_v15, %v1267_v24  ;;  %v1923_v17 = vmul.f32 -1.442695, %v1390_v5 }
 0x257   : >> { %v2109_v23 = vpop.f32.mrf.mxu0  ;;  %v2129_v6 = vpop.f32.mrf.mxu1 }
 0x258   : >> { %2343 = vpow2.f32 %v1921_v27  ;;  %v1377_v26 = vadd.f32 %v1369_v2, %v1173_v4  ;;  %v1391_v20 = vadd.f32 %v1372_v28, %v1268_v25  ;;  %v3276_v27 = vld [vmem:[#allocation40_spill] sm:$0xff]  ;;  %v1374_v25 = vld [vmem:[%s1373_s23] sm:$0xff] }
 0x25a   : >> { %v1922_v63 = vmul.f32 -1.442695, %v1377_v26  ;;  %v1924_v0 = vmul.f32 -1.442695, %v1391_v20 }
 0x25c   : >> { %2345 = vpow2.f32 %v1922_v63 }
 0x25d   : >> { %2347 = vpow2.f32 %v1923_v17 }
 0x25e   : >> { %2349 = vpow2.f32 %v1924_v0 }
 0x265   : >> { %v2344_v7 = vpop.eup %2343 }
 0x266   : >> { %v1384_v21 = vadd.f32 1.0, %v2344_v7 }
 0x268   : >> { %2351 = vrcp.f32 %v1384_v21  ;;  %v1375_v21 = vld [vmem:[%s1373_s23 + $0x8] sm:$0xff] }
 0x269   : >> { %v2346_v3 = vpop.eup %2345 }
 0x26a   : >> { %v1385_v23 = vadd.f32 1.0, %v2346_v3  ;;  %v2348_v2 = vpop.eup %2347 }
 0x26b   : >> { %v1398_v1 = vadd.f32 1.0, %v2348_v2  ;;  %v2350_v22 = vpop.eup %2349 }
 0x26c   : >> { %2353 = vrcp.f32 %v1385_v23  ;;  %v1399_v26 = vadd.f32 1.0, %v2350_v22 }
 0x26d   : >> { %2355 = vrcp.f32 %v1398_v1 }
 0x26e   : >> { %2357 = vrcp.f32 %v1399_v26 }
 0x271   : >> { %v1359_v6 = vpop.f32.mrf.mxu0 }
 0x272   : >> { %v1360_v4 = vadd.f32 %v3276_v27, %v1359_v6  ;;  %v2339_v6 = vpop.permute.xlu0 %2338 }
 0x273   : >> { %v2148_v24 = vpop.f32.mrf.mxu0  ;;  %v2340_v9 = vunpack.i.l.bf16 %v2339_v6 }
 0x275   : >> { %v2352_v5 = vpop.eup %2351  ;;  %v1362_v63 = vpop.f32.mrf.mxu0 }
 0x276   : >> { %v1404_v28 = vmul.f32 %v2352_v5, %v1360_v4  ;;  %v1363_v20 = vadd.f32 %v3276_v27, %v1362_v63  ;;  %v1444_v8 = vpop.permute.xlu0 %1443 }
 0x277   : >> { %v2149_v17 = vpop.f32.mrf.mxu0  ;;  %v1451_v63 = vmul.f32 %v2655_v18, %v1444_v8 }
 0x278   : >> { %v1406_v7 = vadd.f32 %v1404_v28, %v1374_v25  ;;  %v1449_v28 = vpop.permute.xlu1 %1448 }
 0x279   : >> { %v2354_v0 = vpop.eup %2353 }
 0x27a   : >> { %2359 = vtanh.f32 %v1406_v7  ;;  %v1405_v3 = vmul.f32 %v2354_v0, %v1363_v20  ;;  %v2356_v2 = vpop.eup %2355  ;;  %v2341_v0 = vunpack.i.h.bf16 %v2339_v6 }
 0x27b   : >> { %v1410_v1 = vsub.f32 1.0, %v2356_v2  ;;  %v2358_v24 = vpop.eup %2357  ;;  %v1414_v4 = vmul.f32 %v2655_v18, %v2356_v2 }
 0x27c   : >> { %v1407_v23 = vadd.f32 %v1405_v3, %v1375_v21  ;;  %v1411_v5 = vsub.f32 1.0, %v2358_v24  ;;  %v1415_v7 = vmul.f32 %v2651_v19, %v2358_v24 }
 0x27e   : >> { %2361 = vtanh.f32 %v1407_v23  ;;  %v1452_v23 = vmul.f32 %v2651_v19, %v1449_v28 }
 0x287   : >> { %v2360_v22 = vpop.eup %2359 }
 0x288   : >> { %v1412_v10 = vmul.f32 %v2360_v22, %v1410_v1 }
 0x28a   : >> { %v1416_v25 = vadd.f32 %v1414_v4, %v1412_v10 }
 0x28b   : >> { %v2362_v26 = vpop.eup %2361 }
 0x28c   : >> { %v1413_v17 = vmul.f32 %v2362_v26, %v1411_v5  ;;  %v1437_v20 = vmul.f32 %v2340_v9, %v1416_v25 }
 0x28e   : >> { %v1417_v21 = vadd.f32 %v1415_v7, %v1413_v17  ;;  %v1453_v3 = vadd.f32 %v1451_v63, %v1437_v20  }
 0x290   : >> { %v1438_v11 = vmul.f32 %v2341_v0, %v1417_v21  ;;  %v3278_v18 = vmov %v1453_v3  ;;  %1076 = sbr.rel (!%p1074_p1) target bundleno = 368 (0x170), region = 156  ;;  %1455 = vst [vmem:[#allocation2] sm:$0xff] (%p1074_p1), %v1453_v3 }
 0x292   : >> { %v1454_v12 = vadd.f32 %v1452_v23, %v1438_v11  }
 0x294   : >> { %v3277_v19 = vmov %v1454_v12  ;;  %1456 = vst [vmem:[#allocation2 + $0x8] sm:$0xff] (%p1074_p1), %v1454_v12 }
 0x295   : > { %1460 = sbr.rel (%p1928_p4) target bundleno = 923 (0x39b), region = 87 }
 0x29a   : > { %v2363_v8 = vld [vmem:[#allocation12 + $0x74] ss:$8 sps:$4 sm:$0xff]   ;;  %v2365_v9 = vld [vmem:[#allocation12 + $0x70] ss:$8 sps:$4 sm:$0xff]   ;;  %v2673_v10 = vmov 0   ;;  %v1461_v38 = vpack.c.bf16 %v1454_v12, %v1453_v3  ;;  %v1480_v39 = vlaneseq  ;;  %v1617_v58 = vld [vmem:[%s3218_s8] sm:$0xff] }
 0x29b   : > { %1602 = vmatprep.mubr.bf16.mxu0 %v2673_v10  ;;  %1570 = vmatprep.subr.bf16.mxu0 %v2363_v8  ;;  %v2366_v11 = vld [vmem:[#allocation12 + $0x64] ss:$8 sps:$4 sm:$0xff]   ;;  %v2368_v18 = vld [vmem:[#allocation12 + $0x60] ss:$8 sps:$4 sm:$0xff]   ;;  %v2369_v2 = vld [vmem:[#allocation12 + $0x54] ss:$8 sps:$4 sm:$0xff]  }
 0x29c   : > { %1571 = vmatpush1.bf16.msra.mxu0 %v2365_v9  ;;  %v2371_v6 = vld [vmem:[#allocation12 + $0x50] ss:$8 sps:$4 sm:$0xff]   ;;  %v2372_v1 = vld [vmem:[#allocation12 + $0x44] ss:$8 sps:$4 sm:$0xff]   ;;  %v2374_v29 = vld [vmem:[#allocation12 + $0x40] ss:$8 sps:$4 sm:$0xff]  }
 0x29d   : > { %1572 = vmatprep.subr.bf16.mxu0 %v2366_v11  ;;  %v2375_v30 = vld [vmem:[#allocation12 + $0x34] ss:$8 sps:$4 sm:$0xff]   ;;  %v2377_v31 = vld [vmem:[#allocation12 + $0x30] ss:$8 sps:$4 sm:$0xff]   ;;  %v2378_v32 = vld [vmem:[#allocation12 + $0x24] ss:$8 sps:$4 sm:$0xff]  }
 0x29e   : > { %v2380_v33 = vld [vmem:[#allocation12 + $0x20] ss:$8 sps:$4 sm:$0xff]   ;;  %v2381_v34 = vld [vmem:[#allocation12 + $0x14] ss:$8 sps:$4 sm:$0xff]   ;;  %v2383_v35 = vld [vmem:[#allocation12 + $0x10] ss:$8 sps:$4 sm:$0xff]  }
 0x29f   : > { %v2384_v36 = vld [vmem:[#allocation12 + $0x4] ss:$8 sps:$4 sm:$0xff]   ;;  %v2386_v37 = vld [vmem:[#allocation12] ss:$8 sps:$4 sm:$0xff]   ;;  %v1481_v40 = vshrl.u32 %v1480_v39, 7 }
 0x2a0   : > { %1573 = vmatpush1.bf16.msra.mxu0 %v2368_v18  ;;  %v1478_v42 = vld [vmem:[%s3217_s7] sm:$0x3]  ;;  %v1618_v61 = vld [vmem:[%s3218_s8 + $0x8] sm:$0xff] }
 0x2a1   : > { %1574 = vmatprep.subr.bf16.mxu0 %v2369_v2  ;;  %v1482_v41 = vsub.s32 0, %v1481_v40  ;;  %v1486_v43 = vsub.s32 1, %v1481_v40 }
 0x2a3   : > { %v1483_v44 = vrot.slane %v1478_v42, %v1482_v41  ;;  %v1487_v45 = vrot.slane %v1478_v42, %v1486_v43 }
 0x2a4   : > { %1575 = vmatpush1.bf16.msra.mxu0 %v2371_v6 }
 0x2a5   : > { %1576 = vmatprep.subr.bf16.mxu0 %v2372_v1 }
 0x2a8   : > { %1577 = vmatpush1.bf16.msra.mxu0 %v2374_v29 }
 0x2a9   : > { %1578 = vmatprep.subr.bf16.mxu0 %v2375_v30 }
 0x2ac   : > { %1579 = vmatpush1.bf16.msra.mxu0 %v2377_v31 }
 0x2ad   : > { %1580 = vmatprep.subr.bf16.mxu0 %v2378_v32 }
 0x2b0   : > { %1581 = vmatpush1.bf16.msra.mxu0 %v2380_v33 }
 0x2b1   : > { %1582 = vmatprep.subr.bf16.mxu0 %v2381_v34 }
 0x2b4   : > { %1583 = vmatpush1.bf16.msra.mxu0 %v2383_v35 }
 0x2b5   : > { %1584 = vmatprep.subr.bf16.mxu0 %v2384_v36 }
 0x2b8   : > { %1585 = vmatpush1.bf16.msra.mxu0 %v2386_v37 }
 0x2bb   : > { %1603 = vmatmul.mubr.bf16.vlgmr.msra.gmra.mxu0 %v1461_v38 }
 0x37b   : > { %v1604_v46 = vpop.f32.mrf.mxu0 }
 0x37c   : > { %v1605_v47 = vadd.f32 %v1604_v46, %v1483_v44 }
 0x37d   : > { %v1606_v48 = vpop.f32.mrf.mxu0 }
 0x37e   : > { %1613 = vst [vmem:[#allocation15] sm:$0xff] %v1605_v47  ;;  %v1607_v49 = vadd.f32 %v1606_v48, %v1487_v45 }
 0x37f   : > { %v1608_v50 = vpop.f32.mrf.mxu0 }
 0x380   : > { %1615 = vst [vmem:[#allocation17] sm:$0xff] %v1607_v49  ;;  %v1619_v51 = vmul.f32 0.5, %v1607_v49  ;;  %v1609_v52 = vadd.f32 %v1608_v50, %v1483_v44 }
 0x381   : > { %v1610_v53 = vpop.f32.mrf.mxu0 }
 0x382   : > { %v1621_v54 = vmul.f32 1.442695, %v1619_v51  ;;  %1614 = vst [vmem:[#allocation15 + $0x8] sm:$0xff] %v1609_v52  ;;  %v1611_v55 = vadd.f32 %v1610_v53, %v1487_v45 }
 0x384   : > { %2387 = vpow2.f32 %v1621_v54  ;;  %1616 = vst [vmem:[#allocation17 + $0x8] sm:$0xff] %v1611_v55  ;;  %v1620_v56 = vmul.f32 0.5, %v1611_v55 }
 0x386   : > { %v1623_v57 = vmul.f32 1.442695, %v1620_v56 }
 0x388   : > { %2389 = vpow2.f32 %v1623_v57 }
 0x391   : > { %v2388_v59 = vpop.eup %2387 }
 0x392   : > { %v1625_v60 = vmul.f32 %v2388_v59, %v1617_v58 }
 0x394   : > { %v1627_v62 = vadd.f32 %v1625_v60, %v1605_v47 }
 0x395   : > { %v2390_v12 = vpop.eup %2389 }
 0x396   : > { %1629 = vst [vmem:[#allocation14] sm:$0xff] %v1627_v62  ;;  %v1626_v13 = vmul.f32 %v2390_v12, %v1618_v61 }
 0x398   : > { %v1628_v14 = vadd.f32 %v1626_v13, %v1609_v52 }
 0x39a   : > { %1630 = vst [vmem:[#allocation14 + $0x8] sm:$0xff] %v1628_v14 }
 0x39b PF: > { %s3279_s28 = sadd.s32 4294967295, %s2647_s22   ;;  %s2674_s27 = smov [#allocation15]  }
 0x39c   : > { %p3150_p0 = scmp.eq.s32.totalorder %s3279_s28, 2  ;;  %s1656_s2 = sshll.u32 %s2674_s27, 4  ;;  %s1657_s2 = int_to_ptr.vmem [resolvable:$true] %s1656_s2 }
 0x39d   : > { %s2497_s3 = scalar_lea.vmem %s1657_s2, 256  ;;  %p2504_p9 = scmp.lt.s32.totalorder %s1657_s2, %s1657_s2 }
 0x39e   : > { %p2498_p2 = scmp.ne.s32.totalorder %s1657_s2, %s2497_s3  ;;  %p2505_p10 = scmp.lt.s32.totalorder %s2497_s3, %s2497_s3 }
 0x3a0   : > { %p2499_p7 = pnand %p2498_p2, %p3150_p0  ;;  %p2506_p11 = por %p2505_p10, %p2504_p9 }
 0x3a2   : > { %p2500_p6 = pneg %p2499_p7 }
 0x3a4   : > { %p2507_p8 = pnand %p2506_p11, %p2500_p6 }
 0x3a6   : > { %2510 = shalt.err (!%p2507_p8)
}
 0x3a7   : > { %s2675_s6 = smov 128   ;;  %s2676_s24 = smov 8  }
 0x3a8   : > { %2183 = dma.vmem_to_hbm [thread:$0]  (%p3150_p0), %s1657_s2, 256, %s3220_s10, [#allocation16], %s2675_s6, %s2675_s6, %s2676_s24  }
 0x3a9   : > { %s2677_s13 = smov [#allocation14]   ;;  %s2678_s20 = smov [#allocation17]  }
 0x3aa   : > { %s1640_s23 = sshll.u32 %s2677_s13, 4  ;;  %s1672_s30 = sshll.u32 %s2678_s20, 4  ;;  %s1641_s23 = int_to_ptr.vmem [resolvable:$true] %s1640_s23  ;;  %s1673_s30 = int_to_ptr.vmem [resolvable:$true] %s1672_s30 }
 0x3ab   : > { %s2521_s16 = scalar_lea.vmem %s1641_s23, 256  ;;  %p2528_p5 = scmp.lt.s32.totalorder %s1641_s23, %s1641_s23 }
 0x3ac   : > { %p2522_p12 = scmp.ne.s32.totalorder %s1641_s23, %s2521_s16  ;;  %p2529_p1 = scmp.lt.s32.totalorder %s2521_s16, %s2521_s16 }
 0x3ae   : > { %p2523_p13 = pnand %p2522_p12, %p3150_p0  ;;  %p2530_p4 = por %p2529_p1, %p2528_p5 }
 0x3b0   : > { %p2524_p3 = pneg %p2523_p13 }
 0x3b2   : > { %p2531_p2 = pnand %p2530_p4, %p2524_p3 }
 0x3b4   : > { %2534 = shalt.err (!%p2531_p2)
}
 0x3b5   : > { %2181 = dma.vmem_to_hbm [thread:$0]  (%p3150_p0), %s1641_s23, 256, %s3219_s9, [#allocation8], %s2675_s6, %s2675_s6, %s2676_s24  }
 0x3b6   : > { %s2545_s29 = scalar_lea.vmem %s1673_s30, 256  ;;  %p2552_p10 = scmp.lt.s32.totalorder %s1673_s30, %s1673_s30 }
 0x3b7   : > { %p2546_p7 = scmp.ne.s32.totalorder %s1673_s30, %s2545_s29  ;;  %p2553_p11 = scmp.lt.s32.totalorder %s2545_s29, %s2545_s29 }
 0x3b9   : > { %p2547_p6 = pnand %p2546_p7, %p3150_p0  ;;  %p2554_p8 = por %p2553_p11, %p2552_p10 }
 0x3bb   : > { %p2548_p9 = pneg %p2547_p6 }
 0x3bd   : > { %p2555_p12 = pnand %p2554_p8, %p2548_p9 }
 0x3bf   : > { %2558 = shalt.err (!%p2555_p12)
}
 0x3c0   : > { %2185 = dma.vmem_to_hbm [thread:$0]  (%p3150_p0), %s1673_s30, 256, %s3221_s11, [#allocation16], %s2675_s6, %s2675_s6, %s2676_s24  }
 0x3c1   : > { %2618 = dma.done.wait (%p3150_p0), [#allocation8], 256  }
 0x3c2   : > { %2620 = vsyncadd (%p3150_p0), [#allocation8], 4294967040 }
 0x3c3   : > { %2622 = dma.done.wait (%p3150_p0), [#allocation16], 512  }
 0x3c4   : > { %2624 = vsyncadd (%p3150_p0), [#allocation16], 4294966784 }
 0x3c5 PF: > { %s29_s22 = sadd.s32 1, %s2647_s22   ;;  %s3281_s2 = sld [smem:[#allocation23_spill]] }
 0x3c6   : > { %p26_p13 = scmp.ge.s32.totalorder %s29_s22, 5   ;;  %s3282_s17 = smov %s2631_s18 }
 0x3c7   : > { %s3283_s18 = smov %s2635_s19  ;;  %s3284_s19 = smov %s2840_s12 }
 0x3c8   : > { %s3285_s20 = smov %s2643_s21  ;;  %28 = sbr.rel (!%p26_p13) target bundleno = 12 (0xc), region = 167 }
 0x3cb   : > { %s3286_s21 = smov %s3281_s2 }
 0x3cd   :  { %1696 = vsyncpa [#allocation7], 1 }
 0x3ce   :  { %1698 = vsyncpa [#allocation7 + $0x1], 1 }
 0x3cf   :  { %1699 = vsyncpa [#allocation10], 1 }
 0x3d0   :  { %1700 = vsyncpa [#allocation13], 1 }
 0x3d1   :  { %1701 = vsyncpa [#allocation8], 1 }
 0x3d2   :  { %1703 = vsyncpa [#allocation8 + $0x1], 1 }
 0x3d3   :  { %1704 = vsyncpa [#allocation16], 1 }

</bundles_post_ra>
